<compile_context>
chip_gen: v6e
topology: v6e:2x2x1
jax: 0.10.0
libtpu: 0.0.40
codegen_flags: <defaults>
</compile_context>

<pallas_src>
import functools

import jax
import jax.numpy as jnp
from jax import lax
from jax.experimental import pallas as pl
from jax.experimental.pallas import tpu as pltpu


def _vmem_capacity_bytes():
    """Physical VMEM of the local TPU; conservative (v7x-sized) fallback."""
    try:
        return int(pltpu.get_tpu_info().vmem_capacity_bytes)
    except Exception:
        return 64 * 2 ** 20


def _dsc_kernel(x_hbm, wdw_ref, bdw_ref, wpw_ref, bpw_ref, out_hbm,
                xbuf, obuf, in_sem, out_sem, *,
                kh, kw, stride, dilation, th, th_in, n_th, w_out, sub_th,
                pointwise_dtype):
    """One grid step = one batch element; H tiles are pipelined in-kernel.

    x_hbm   : (N, H_tot, W_pad, C_in_p)   act_dtype   padded input, stays in HBM
    wdw_ref : (KH, KW, C_in_p)            f32         depthwise weights (BN folded)
    bdw_ref : (1, C_in_p)                 f32         depthwise bias    (BN folded)
    wpw_ref : (C_in_p, C_out_p)           bf16/f32    pointwise weights (BN folded)
    bpw_ref : (1, C_out_p)                f32         pointwise bias    (BN folded)
    out_hbm : (N, n_th, th*W_out, C_out_p) out_dtype  output, stays in HBM
    xbuf    : (2, th_in, W_pad, C_in_p)   act_dtype   input double buffer
    obuf    : (2, th*W_out, C_out_p)      out_dtype   output double buffer
    """
    b = pl.program_id(0)
    c_in_p = wdw_ref.shape[-1]

    # Weights/biases (BN already folded) — loaded once, hoisted out of the H loop.
    wdw = wdw_ref[...]
    bdw = bdw_ref[...][0]
    wpw = wpw_ref[...]
    bpw = bpw_ref[...][0]

    def start_in(t, slot):
        pltpu.make_async_copy(
            x_hbm.at[b, pl.ds(t * (th * stride), th_in), :, :],
            xbuf.at[slot], in_sem.at[slot]).start()

    def wait_in(slot):
        pltpu.make_async_copy(
            x_hbm.at[b, pl.ds(0, th_in), :, :],
            xbuf.at[slot], in_sem.at[slot]).wait()

    def start_out(t, slot):
        pltpu.make_async_copy(obuf.at[slot], out_hbm.at[b, t],
                              out_sem.at[slot]).start()

    def wait_out(slot):
        pltpu.make_async_copy(obuf.at[slot], out_hbm.at[b, 0],
                              out_sem.at[slot]).wait()

    start_in(0, 0)                                   # prime the input pipeline

    def body(t, carry):
        slot = t & 1
        wait_in(slot)

        @pl.when(t + 1 < n_th)                       # prefetch next H tile
        def _():
            start_in(t + 1, 1 - slot)

        @pl.when(t >= 2)                             # obuf slot reused -> drain its old DMA
        def _():
            wait_out(slot)

        xs = xbuf.at[slot]
        ob = obuf.at[slot]

        # ---- sub-blocked body: depthwise (VPU, f32 acc) -> 1x1 matmul (MXU) per chunk,
        #      so MXU of chunk i overlaps VPU of chunk i+1 and temporaries stay bounded.
        n_sub = -(-th // sub_th)
        for s in range(n_sub):
            r0 = s * sub_th
            rows = min(sub_th, th - r0)
            acc = jnp.zeros((rows, w_out, c_in_p), jnp.float32) + bdw
            for ikh in range(kh):
                for ikw in range(kw):
                    hh = r0 * stride + ikh * dilation
                    ww = ikw * dilation
                    if stride == 1:
                        patch = xs[pl.ds(hh, rows), pl.ds(ww, w_out), :]
                    else:
                        patch = xs[pl.ds(hh, rows, stride), pl.ds(ww, w_out, stride), :]
                    acc = acc + patch.astype(jnp.float32) * wdw[ikh, ikw]
            y = jnp.maximum(acc, 0.0)                # depthwise BN+ReLU (BN folded)
            flat = y.reshape(rows * w_out, c_in_p).astype(pointwise_dtype)
            z = jnp.dot(flat, wpw, preferred_element_type=jnp.float32)
            z = jnp.maximum(z + bpw, 0.0)            # pointwise BN+ReLU (BN folded)
            ob[pl.ds(r0 * w_out, rows * w_out), :] = z.astype(obuf.dtype)

        start_out(t, slot)
        return carry

    lax.fori_loop(0, n_th, body, 0)

    # Drain outstanding output DMAs (at most the last two) before the kernel ends.
    if n_th >= 2:
        wait_out((n_th - 2) & 1)
    wait_out((n_th - 1) & 1)


def depthwise_separable_conv(x_nchw, params, *, kernel_size, stride=1, padding=0,
                             dilation=1, h_tile=None,
                             act_dtype=jnp.bfloat16,
                             pointwise_dtype=jnp.bfloat16,
                             out_dtype=jnp.float32):
    """x_nchw: (N, C_in, H, W) float32. Returns (N, C_out, H_out, W_out) float32.

    act_dtype       : dtype activations are DMA'd / staged in (bf16 default halves HBM+VMEM).
    pointwise_dtype : MXU operand dtype of the 1x1 conv (bf16 default; f32 for parity checks).
    out_dtype       : dtype of the HBM output slab (f32 default; bf16 halves writeback).
    """
    n, c_in, h, w = x_nchw.shape
    kh = kw = kernel_size
    h_out = (h + 2 * padding - dilation * (kh - 1) - 1) // stride + 1
    w_out = (w + 2 * padding - dilation * (kw - 1) - 1) // stride + 1

    eps = 1e-5
    # ---- fold eval-mode BatchNorm into conv weights / biases.
    sdw = params["bn_d_gamma"] / jnp.sqrt(params["bn_d_var"] + eps)
    tdw = params["bn_d_beta"] - params["bn_d_mean"] * sdw
    spw = params["bn_p_gamma"] / jnp.sqrt(params["bn_p_var"] + eps)
    tpw = params["bn_p_beta"] - params["bn_p_mean"] * spw

    wdw_f = (params["w_dw"] * sdw[None, None, :]).astype(jnp.float32)   # (KH,KW,Cin)
    bdw_f = (params["b_dw"] * sdw + tdw).astype(jnp.float32)            # (Cin,)
    wpw_f = (params["w_pw"] * spw[None, :]).astype(jnp.float32)         # (Cin,Cout)
    bpw_f = (params["b_pw"] * spw + tpw).astype(jnp.float32)            # (Cout,)
    c_out = wpw_f.shape[-1]

    # ---- lane-dense channel padding (multiple of the 128-lane vreg width).
    LANE = 128
    c_in_p = -(-c_in // LANE) * LANE
    c_out_p = -(-c_out // LANE) * LANE
    wdw_f = jnp.pad(wdw_f, ((0, 0), (0, 0), (0, c_in_p - c_in)))
    bdw_f = jnp.pad(bdw_f, (0, c_in_p - c_in)).reshape(1, c_in_p)
    wpw_f = jnp.pad(wpw_f, ((0, c_in_p - c_in), (0, c_out_p - c_out))).astype(pointwise_dtype)
    bpw_f = jnp.pad(bpw_f, (0, c_out_p - c_out)).reshape(1, c_out_p)

    w_pad_len = w + 2 * padding
    act_sz = jnp.dtype(act_dtype).itemsize
    out_sz = jnp.dtype(out_dtype).itemsize
    pw_sz = jnp.dtype(pointwise_dtype).itemsize

    # ---- choose the H tile so the two manual double buffers fit comfortably in VMEM
    #      (queried capacity; conservative 64 MiB fallback keeps v7x safe).
    cap = _vmem_capacity_bytes()
    if h_tile is None:
        budget = min(cap // 3, 40 * 2 ** 20)     # activation staging (both double buffers)
        in_row = stride * w_pad_len * c_in_p * act_sz
        out_row = w_out * c_out_p * out_sz
        h_tile = max(8, budget // max(1, 2 * (in_row + out_row)))
    th = int(max(1, min(h_tile, h_out)))
    n_th = -(-h_out // th)
    h_out_p = n_th * th
    th_in = (th - 1) * stride + (kh - 1) * dilation + 1
    h_in_need = (h_out_p - 1) * stride + (kh - 1) * dilation + 1
    extra_rows = max(0, h_in_need - (h + 2 * padding))

    # ---- single host-side pass: NCHW -> NHWC, conv/tile/channel zero-pad, cast to act_dtype.
    #      (The old per-tile halo gather is gone: overlapping H windows are DMA'd in-kernel
    #       straight out of this padded HBM tensor.)
    x_nhwc = jnp.transpose(x_nchw, (0, 2, 3, 1))
    x_pad = jnp.pad(x_nhwc, ((0, 0),
                             (padding, padding + extra_rows),
                             (padding, padding),
                             (0, c_in_p - c_in))).astype(act_dtype)

    lane_out = th * w_out
    # ~512 flat rows per depthwise->matmul chunk (bounds temporaries, feeds the MXU well).
    sub_th = max(1, min(th, 512 // max(1, w_out)))

    kernel = functools.partial(
        _dsc_kernel, kh=kh, kw=kw, stride=stride, dilation=dilation,
        th=th, th_in=th_in, n_th=n_th, w_out=w_out, sub_th=sub_th,
        pointwise_dtype=pointwise_dtype)

    full = lambda shape: pl.BlockSpec(shape, lambda b: (0,) * len(shape))

    # ---- VMEM accounting: staging buffers + double-buffered weights + in-kernel temporaries.
    xbuf_bytes = 2 * th_in * w_pad_len * c_in_p * act_sz
    obuf_bytes = 2 * lane_out * c_out_p * out_sz
    weight_bytes = (wdw_f.size * 4 + c_in_p * 4 + wpw_f.size * pw_sz + c_out_p * 4)
    tmp_bytes = sub_th * w_out * (2 * c_in_p * 4 + c_in_p * 2 + 2 * c_out_p * 4)
    vmem_need = xbuf_bytes + obuf_bytes + 2 * weight_bytes + tmp_bytes
    vmem_limit = int(min(max(32 * 2 ** 20, int(1.5 * vmem_need) + 4 * 2 ** 20),
                         max(32 * 2 ** 20, min(cap - 12 * 2 ** 20, 100 * 2 ** 20))))

    flops = 2 * n * h_out * w_out * c_in * (kh * kw + c_out)
    bytes_accessed = (x_pad.size * act_sz + n * n_th * lane_out * c_out_p * out_sz
                      + weight_bytes)

    out_flat = pl.pallas_call(
        kernel,
        out_shape=jax.ShapeDtypeStruct((n, n_th, lane_out, c_out_p), out_dtype),
        grid_spec=pltpu.PrefetchScalarGridSpec(
            num_scalar_prefetch=0,
            grid=(n,),
            in_specs=[
                pl.BlockSpec(memory_space=pl.ANY),   # padded input stays in HBM (manual DMA)
                full((kh, kw, c_in_p)),              # depthwise weights (BN folded)
                full((1, c_in_p)),                   # depthwise bias    (BN folded)
                full((c_in_p, c_out_p)),             # pointwise weights (BN folded, bf16/f32)
                full((1, c_out_p)),                  # pointwise bias    (BN folded)
            ],
            out_specs=pl.BlockSpec(memory_space=pl.ANY),   # output written via manual DMA
            scratch_shapes=[
                pltpu.VMEM((2, th_in, w_pad_len, c_in_p), act_dtype),   # input double buffer
                pltpu.VMEM((2, lane_out, c_out_p), out_dtype),          # output double buffer
                pltpu.SemaphoreType.DMA((2,)),                          # input DMA sems
                pltpu.SemaphoreType.DMA((2,)),                          # output DMA sems
            ]),
        compiler_params=pltpu.CompilerParams(
            dimension_semantics=("parallel",),
            vmem_limit_bytes=vmem_limit),
        cost_estimate=pl.CostEstimate(flops=int(flops), transcendentals=0,
                                      bytes_accessed=int(bytes_accessed)),
    )(x_pad, wdw_f, bdw_f, wpw_f, bpw_f)

    # un-pack: (N, n_th, TH*W_out, C_out_p) -> (N, C_out, H_out, W_out)
    out = out_flat.reshape(n, n_th, th, w_out, c_out_p)[..., :c_out]
    out = out.reshape(n, h_out_p, w_out, c_out)[:, :h_out]
    return jnp.transpose(out, (0, 3, 1, 2)).astype(jnp.float32)


def _reference(x_nchw, params, *, kernel_size, stride, padding, dilation):
    """Pure-JAX reference (lax convs) for correctness check."""
    eps = 1e-5
    c_in = x_nchw.shape[1]
    w_dw = jnp.transpose(params["w_dw"], (2, 0, 1))[:, None, :, :]
    y = lax.conv_general_dilated(
        x_nchw, w_dw, window_strides=(stride, stride),
        padding=[(padding, padding), (padding, padding)],
        rhs_dilation=(dilation, dilation),
        dimension_numbers=("NCHW", "OIHW", "NCHW"),
        feature_group_count=c_in)
    y = y + params["b_dw"][None, :, None, None]
    s = params["bn_d_gamma"] / jnp.sqrt(params["bn_d_var"] + eps)
    y = y * s[None, :, None, None] + (params["bn_d_beta"] - params["bn_d_mean"] * s)[None, :, None, None]
    y = jnp.maximum(y, 0.0)
    w_pw = jnp.transpose(params["w_pw"], (1, 0))[:, :, None, None]
    z = lax.conv_general_dilated(
        y, w_pw, window_strides=(1, 1), padding=[(0, 0), (0, 0)],
        dimension_numbers=("NCHW", "OIHW", "NCHW"))
    z = z + params["b_pw"][None, :, None, None]
    s2 = params["bn_p_gamma"] / jnp.sqrt(params["bn_p_var"] + eps)
    z = z * s2[None, :, None, None] + (params["bn_p_beta"] - params["bn_p_mean"] * s2)[None, :, None, None]
    return jnp.maximum(z, 0.0)


if __name__ == "__main__":
    # Small shapes: batch=2, in_channels=4, out_channels=8, spatial=16, k=3, pad=1.
    N, C_IN, C_OUT, H, W = 2, 4, 8, 16, 16
    K, STRIDE, PAD, DIL = 3, 1, 1, 1

    key = jax.random.PRNGKey(0)
    keys = jax.random.split(key, 12)
    x = jax.random.normal(keys[0], (N, C_IN, H, W), jnp.float32)

    params = {
        "w_dw": 0.1 * jax.random.normal(keys[1], (K, K, C_IN), jnp.float32),
        "b_dw": 0.05 * jax.random.normal(keys[2], (C_IN,), jnp.float32),
        "bn_d_gamma": 1.0 + 0.1 * jax.random.normal(keys[3], (C_IN,), jnp.float32),
        "bn_d_beta": 0.1 * jax.random.normal(keys[4], (C_IN,), jnp.float32),
        "bn_d_mean": 0.1 * jax.random.normal(keys[5], (C_IN,), jnp.float32),
        "bn_d_var": jnp.abs(1.0 + 0.1 * jax.random.normal(keys[6], (C_IN,), jnp.float32)),
        "w_pw": 0.1 * jax.random.normal(keys[7], (C_IN, C_OUT), jnp.float32),
        "b_pw": 0.05 * jax.random.normal(keys[8], (C_OUT,), jnp.float32),
        "bn_p_gamma": 1.0 + 0.1 * jax.random.normal(keys[9], (C_OUT,), jnp.float32),
        "bn_p_beta": 0.1 * jax.random.normal(keys[10], (C_OUT,), jnp.float32),
        "bn_p_mean": 0.1 * jax.random.normal(keys[11], (C_OUT,), jnp.float32),
        "bn_p_var": jnp.ones((C_OUT,), jnp.float32),
    }

    ref = _reference(x, params, kernel_size=K, stride=STRIDE, padding=PAD, dilation=DIL)

    # 1) strict check: f32 activations + f32 MXU operands, forced 2 H-tiles so the
    #    in-kernel double-buffered halo DMA pipeline is exercised.
    out32 = depthwise_separable_conv(x, params, kernel_size=K, stride=STRIDE, padding=PAD,
                                     dilation=DIL, h_tile=8,
                                     act_dtype=jnp.float32,
                                     pointwise_dtype=jnp.float32,
                                     out_dtype=jnp.float32)
    out32 = jax.block_until_ready(out32)
    assert out32.shape == (N, C_OUT, H, W), out32.shape
    assert jnp.allclose(out32, ref, atol=1e-4, rtol=1e-4), float(jnp.max(jnp.abs(out32 - ref)))

    # 2) default fast path: auto H tile, bf16 activation DMA + bf16 MXU operands.
    out_bf = depthwise_separable_conv(x, params, kernel_size=K, stride=STRIDE, padding=PAD,
                                      dilation=DIL)
    out_bf = jax.block_until_ready(out_bf)
    assert out_bf.shape == (N, C_OUT, H, W), out_bf.shape
    assert jnp.allclose(out_bf, ref, atol=3e-2, rtol=3e-2), float(jnp.max(jnp.abs(out_bf - ref)))

    print("KERNEL_OK")
</pallas_src>

<mosaic_0001>
module attributes {stable_mosaic.version = 11 : i64} {
  func.func @_dsc_kernel(%arg0: i32, %arg1: memref<2x18x18x128xf32, #tpu.memory_space<any>>, %arg2: memref<3x3x128xf32, #tpu.memory_space<vmem>>, %arg3: memref<1x128xf32, #tpu.memory_space<vmem>>, %arg4: memref<128x128xf32, #tpu.memory_space<vmem>>, %arg5: memref<1x128xf32, #tpu.memory_space<vmem>>, %arg6: memref<2x2x128x128xf32, #tpu.memory_space<any>>, %arg7: memref<2x10x18x128xf32, #tpu.memory_space<vmem>>, %arg8: memref<2x128x128xf32, #tpu.memory_space<vmem>>, %arg9: memref<2x!tpu.dma_semaphore, #tpu.memory_space<semaphore_mem>>, %arg10: memref<2x!tpu.dma_semaphore, #tpu.memory_space<semaphore_mem>>) attributes {dimension_semantics = [#tpu.dimension_semantics<parallel>], iteration_bounds = array<i64: 2>, scalar_prefetch = 0 : i64, scratch_operands = 4 : i64, tpu.core_type = #tpu.core_type<tc>, window_params = [{}, {pipeline_mode = #tpu.pipeline_mode<synchronous>, transform_indices = @transform_1, window_bounds = array<i64: 3, 3, 128>}, {pipeline_mode = #tpu.pipeline_mode<synchronous>, transform_indices = @transform_2, window_bounds = array<i64: 1, 128>}, {pipeline_mode = #tpu.pipeline_mode<synchronous>, transform_indices = @transform_3, window_bounds = array<i64: 128, 128>}, {pipeline_mode = #tpu.pipeline_mode<synchronous>, transform_indices = @transform_4, window_bounds = array<i64: 1, 128>}, {}]} {
    %c0 = arith.constant 0 : index
    %c0_0 = arith.constant 0 : index
    %c0_1 = arith.constant 0 : index
    %0 = vector.load %arg2[%c0, %c0_0, %c0_1] : memref<3x3x128xf32, #tpu.memory_space<vmem>>, vector<3x3x128xf32>
    %c0_2 = arith.constant 0 : index
    %c0_3 = arith.constant 0 : index
    %1 = vector.load %arg3[%c0_2, %c0_3] : memref<1x128xf32, #tpu.memory_space<vmem>>, vector<1x128xf32>
    %2 = vector.shape_cast %1 : vector<1x128xf32> to vector<128xf32>
    %c0_4 = arith.constant 0 : index
    %c0_5 = arith.constant 0 : index
    %3 = vector.load %arg4[%c0_4, %c0_5] : memref<128x128xf32, #tpu.memory_space<vmem>>, vector<128x128xf32>
    %c0_6 = arith.constant 0 : index
    %c0_7 = arith.constant 0 : index
    %4 = vector.load %arg5[%c0_6, %c0_7] : memref<1x128xf32, #tpu.memory_space<vmem>>, vector<1x128xf32>
    %5 = vector.shape_cast %4 : vector<1x128xf32> to vector<128xf32>
    %c0_i32 = arith.constant 0 : i32
    %c0_i32_8 = arith.constant 0 : i32
    %c0_i32_9 = arith.constant 0 : i32
    %c0_i32_10 = arith.constant 0 : i32
    %c0_i32_11 = arith.constant 0 : i32
    %6 = tpu.memref_slice %arg1[%arg0, %c0_i32_9, %c0_i32_10, %c0_i32_11] : memref<2x18x18x128xf32, #tpu.memory_space<any>> -> memref<1x10x18x128xf32, #tpu.memory_space<any>>
    %7 = tpu.memref_squeeze %6 : memref<1x10x18x128xf32, #tpu.memory_space<any>> -> memref<10x18x128xf32, #tpu.memory_space<any>>
    %c0_i32_12 = arith.constant 0 : i32
    %c0_i32_13 = arith.constant 0 : i32
    %c0_i32_14 = arith.constant 0 : i32
    %8 = tpu.memref_slice %arg7[%c0_i32, %c0_i32_12, %c0_i32_13, %c0_i32_14] : memref<2x10x18x128xf32, #tpu.memory_space<vmem>> -> memref<1x10x18x128xf32, #tpu.memory_space<vmem>>
    %9 = tpu.memref_squeeze %8 : memref<1x10x18x128xf32, #tpu.memory_space<vmem>> -> memref<10x18x128xf32, #tpu.memory_space<vmem>>
    %10 = tpu.memref_slice %arg9[%c0_i32_8] : memref<2x!tpu.dma_semaphore, #tpu.memory_space<semaphore_mem>> -> memref<1x!tpu.dma_semaphore, #tpu.memory_space<semaphore_mem>>
    %11 = tpu.memref_squeeze %10 : memref<1x!tpu.dma_semaphore, #tpu.memory_space<semaphore_mem>> -> memref<!tpu.dma_semaphore, #tpu.memory_space<semaphore_mem>>
    tpu.enqueue_dma source(%7 : memref<10x18x128xf32, #tpu.memory_space<any>>) target(%9 : memref<10x18x128xf32, #tpu.memory_space<vmem>>) target_semaphore(%11 : memref<!tpu.dma_semaphore, #tpu.memory_space<semaphore_mem>>)
    %c0_i32_15 = arith.constant 0 : i32
    %c2_i32 = arith.constant 2 : i32
    %12 = arith.addi %c0_i32_15, %c2_i32 : i32
    %c1_i32 = arith.constant 1 : i32
    scf.for %arg11 = %c0_i32_15 to %12 step %c1_i32  : i32 {
      %c1_i32_31 = arith.constant 1 : i32
      %25 = arith.andi %arg11, %c1_i32_31 : i32
      %c0_i32_32 = arith.constant 0 : i32
      %c0_i32_33 = arith.constant 0 : i32
      %c0_i32_34 = arith.constant 0 : i32
      %26 = tpu.memref_slice %arg1[%arg0, %c0_i32_32, %c0_i32_33, %c0_i32_34] : memref<2x18x18x128xf32, #tpu.memory_space<any>> -> memref<1x10x18x128xf32, #tpu.memory_space<any>>
      %27 = tpu.memref_squeeze %26 : memref<1x10x18x128xf32, #tpu.memory_space<any>> -> memref<10x18x128xf32, #tpu.memory_space<any>>
      %c0_i32_35 = arith.constant 0 : i32
      %c0_i32_36 = arith.constant 0 : i32
      %c0_i32_37 = arith.constant 0 : i32
      %28 = tpu.memref_slice %arg7[%25, %c0_i32_35, %c0_i32_36, %c0_i32_37] : memref<2x10x18x128xf32, #tpu.memory_space<vmem>> -> memref<1x10x18x128xf32, #tpu.memory_space<vmem>>
      %29 = tpu.memref_squeeze %28 : memref<1x10x18x128xf32, #tpu.memory_space<vmem>> -> memref<10x18x128xf32, #tpu.memory_space<vmem>>
      %30 = tpu.memref_slice %arg9[%25] : memref<2x!tpu.dma_semaphore, #tpu.memory_space<semaphore_mem>> -> memref<1x!tpu.dma_semaphore, #tpu.memory_space<semaphore_mem>>
      %31 = tpu.memref_squeeze %30 : memref<1x!tpu.dma_semaphore, #tpu.memory_space<semaphore_mem>> -> memref<!tpu.dma_semaphore, #tpu.memory_space<semaphore_mem>>
      tpu.wait_dma2 semaphore(%31 : memref<!tpu.dma_semaphore, #tpu.memory_space<semaphore_mem>>) src(%27 : memref<10x18x128xf32, #tpu.memory_space<any>>) dst(%29 : memref<10x18x128xf32, #tpu.memory_space<vmem>>)
      %c1_i32_38 = arith.constant 1 : i32
      %32 = arith.addi %arg11, %c1_i32_38 : i32
      %c2_i32_39 = arith.constant 2 : i32
      %33 = arith.cmpi slt, %32, %c2_i32_39 : i32
      %34 = arith.extui %33 : i1 to i32
      %c0_i32_40 = arith.constant 0 : i32
      %35 = arith.cmpi ne, %34, %c0_i32_40 : i32
      scf.if %35 {
        %c1_i32_106 = arith.constant 1 : i32
        %142 = arith.addi %arg11, %c1_i32_106 : i32
        %c1_i32_107 = arith.constant 1 : i32
        %143 = arith.subi %c1_i32_107, %25 : i32
        %c8_i32 = arith.constant 8 : i32
        %144 = arith.muli %142, %c8_i32 : i32
        %c0_i32_108 = arith.constant 0 : i32
        %c0_i32_109 = arith.constant 0 : i32
        %145 = tpu.memref_slice %arg1[%arg0, %144, %c0_i32_108, %c0_i32_109] : memref<2x18x18x128xf32, #tpu.memory_space<any>> -> memref<1x10x18x128xf32, #tpu.memory_space<any>>
        %146 = tpu.memref_squeeze %145 : memref<1x10x18x128xf32, #tpu.memory_space<any>> -> memref<10x18x128xf32, #tpu.memory_space<any>>
        %c0_i32_110 = arith.constant 0 : i32
        %c0_i32_111 = arith.constant 0 : i32
        %c0_i32_112 = arith.constant 0 : i32
        %147 = tpu.memref_slice %arg7[%143, %c0_i32_110, %c0_i32_111, %c0_i32_112] : memref<2x10x18x128xf32, #tpu.memory_space<vmem>> -> memref<1x10x18x128xf32, #tpu.memory_space<vmem>>
        %148 = tpu.memref_squeeze %147 : memref<1x10x18x128xf32, #tpu.memory_space<vmem>> -> memref<10x18x128xf32, #tpu.memory_space<vmem>>
        %149 = tpu.memref_slice %arg9[%143] : memref<2x!tpu.dma_semaphore, #tpu.memory_space<semaphore_mem>> -> memref<1x!tpu.dma_semaphore, #tpu.memory_space<semaphore_mem>>
        %150 = tpu.memref_squeeze %149 : memref<1x!tpu.dma_semaphore, #tpu.memory_space<semaphore_mem>> -> memref<!tpu.dma_semaphore, #tpu.memory_space<semaphore_mem>>
        tpu.enqueue_dma source(%146 : memref<10x18x128xf32, #tpu.memory_space<any>>) target(%148 : memref<10x18x128xf32, #tpu.memory_space<vmem>>) target_semaphore(%150 : memref<!tpu.dma_semaphore, #tpu.memory_space<semaphore_mem>>)
      } else {
      }
      %c2_i32_41 = arith.constant 2 : i32
      %36 = arith.cmpi sge, %arg11, %c2_i32_41 : i32
      %37 = arith.extui %36 : i1 to i32
      %c0_i32_42 = arith.constant 0 : i32
      %38 = arith.cmpi ne, %37, %c0_i32_42 : i32
      scf.if %38 {
        %c0_i32_106 = arith.constant 0 : i32
        %c0_i32_107 = arith.constant 0 : i32
        %c0_i32_108 = arith.constant 0 : i32
        %142 = tpu.memref_slice %arg8[%25, %c0_i32_107, %c0_i32_108] : memref<2x128x128xf32, #tpu.memory_space<vmem>> -> memref<1x128x128xf32, #tpu.memory_space<vmem>>
        %143 = tpu.memref_squeeze %142 : memref<1x128x128xf32, #tpu.memory_space<vmem>> -> memref<128x128xf32, #tpu.memory_space<vmem>>
        %c0_i32_109 = arith.constant 0 : i32
        %c0_i32_110 = arith.constant 0 : i32
        %144 = tpu.memref_slice %arg6[%arg0, %c0_i32_106, %c0_i32_109, %c0_i32_110] : memref<2x2x128x128xf32, #tpu.memory_space<any>> -> memref<1x1x128x128xf32, #tpu.memory_space<any>>
        %145 = tpu.memref_squeeze %144 : memref<1x1x128x128xf32, #tpu.memory_space<any>> -> memref<128x128xf32, #tpu.memory_space<any>>
        %146 = tpu.memref_slice %arg10[%25] : memref<2x!tpu.dma_semaphore, #tpu.memory_space<semaphore_mem>> -> memref<1x!tpu.dma_semaphore, #tpu.memory_space<semaphore_mem>>
        %147 = tpu.memref_squeeze %146 : memref<1x!tpu.dma_semaphore, #tpu.memory_space<semaphore_mem>> -> memref<!tpu.dma_semaphore, #tpu.memory_space<semaphore_mem>>
        tpu.wait_dma2 semaphore(%147 : memref<!tpu.dma_semaphore, #tpu.memory_space<semaphore_mem>>) src(%143 : memref<128x128xf32, #tpu.memory_space<vmem>>) dst(%145 : memref<128x128xf32, #tpu.memory_space<any>>)
      } else {
      }
      %cst = arith.constant 0.000000e+00 : f32
      %39 = vector.broadcast %cst : f32 to vector<8x16x128xf32>
      %40 = vector.shape_cast %2 : vector<128xf32> to vector<1x1x128xf32>
      %41 = vector.broadcast %40 : vector<1x1x128xf32> to vector<8x16x128xf32>
      %42 = arith.addf %39, %41 : vector<8x16x128xf32>
      %c0_i32_43 = arith.constant 0 : i32
      %c0_i32_44 = arith.constant 0 : i32
      %c0_i32_45 = arith.constant 0 : i32
      %43 = tpu.memref_slice %arg7[%25, %c0_i32_43, %c0_i32_44, %c0_i32_45] : memref<2x10x18x128xf32, #tpu.memory_space<vmem>> -> memref<1x10x18x128xf32, #tpu.memory_space<vmem>>
      %44 = tpu.memref_squeeze %43 : memref<1x10x18x128xf32, #tpu.memory_space<vmem>> -> memref<10x18x128xf32, #tpu.memory_space<vmem>>
      %c0_46 = arith.constant 0 : index
      %c0_47 = arith.constant 0 : index
      %c0_48 = arith.constant 0 : index
      %45 = vector.load %44[%c0_46, %c0_47, %c0_48] : memref<10x18x128xf32, #tpu.memory_space<vmem>>, vector<8x16x128xf32>
      %46 = vector.extract_strided_slice %0 {offsets = [0, 0, 0], sizes = [1, 1, 128], strides = [1, 1, 1]} : vector<3x3x128xf32> to vector<1x1x128xf32>
      %47 = vector.shape_cast %46 : vector<1x1x128xf32> to vector<128xf32>
      %48 = vector.shape_cast %47 : vector<128xf32> to vector<1x1x128xf32>
      %49 = vector.broadcast %48 : vector<1x1x128xf32> to vector<8x16x128xf32>
      %50 = arith.mulf %45, %49 : vector<8x16x128xf32>
      %51 = arith.addf %42, %50 : vector<8x16x128xf32>
      %c0_i32_49 = arith.constant 0 : i32
      %c0_i32_50 = arith.constant 0 : i32
      %c0_i32_51 = arith.constant 0 : i32
      %52 = tpu.memref_slice %arg7[%25, %c0_i32_49, %c0_i32_50, %c0_i32_51] : memref<2x10x18x128xf32, #tpu.memory_space<vmem>> -> memref<1x10x18x128xf32, #tpu.memory_space<vmem>>
      %53 = tpu.memref_squeeze %52 : memref<1x10x18x128xf32, #tpu.memory_space<vmem>> -> memref<10x18x128xf32, #tpu.memory_space<vmem>>
      %c0_52 = arith.constant 0 : index
      %c1 = arith.constant 1 : index
      %c0_53 = arith.constant 0 : index
      %54 = vector.load %53[%c0_52, %c1, %c0_53] : memref<10x18x128xf32, #tpu.memory_space<vmem>>, vector<8x16x128xf32>
      %55 = vector.extract_strided_slice %0 {offsets = [0, 1, 0], sizes = [1, 1, 128], strides = [1, 1, 1]} : vector<3x3x128xf32> to vector<1x1x128xf32>
      %56 = vector.shape_cast %55 : vector<1x1x128xf32> to vector<128xf32>
      %57 = vector.shape_cast %56 : vector<128xf32> to vector<1x1x128xf32>
      %58 = vector.broadcast %57 : vector<1x1x128xf32> to vector<8x16x128xf32>
      %59 = arith.mulf %54, %58 : vector<8x16x128xf32>
      %60 = arith.addf %51, %59 : vector<8x16x128xf32>
      %c0_i32_54 = arith.constant 0 : i32
      %c0_i32_55 = arith.constant 0 : i32
      %c0_i32_56 = arith.constant 0 : i32
      %61 = tpu.memref_slice %arg7[%25, %c0_i32_54, %c0_i32_55, %c0_i32_56] : memref<2x10x18x128xf32, #tpu.memory_space<vmem>> -> memref<1x10x18x128xf32, #tpu.memory_space<vmem>>
      %62 = tpu.memref_squeeze %61 : memref<1x10x18x128xf32, #tpu.memory_space<vmem>> -> memref<10x18x128xf32, #tpu.memory_space<vmem>>
      %c0_57 = arith.constant 0 : index
      %c2 = arith.constant 2 : index
      %c0_58 = arith.constant 0 : index
      %63 = vector.load %62[%c0_57, %c2, %c0_58] : memref<10x18x128xf32, #tpu.memory_space<vmem>>, vector<8x16x128xf32>
      %64 = vector.extract_strided_slice %0 {offsets = [0, 2, 0], sizes = [1, 1, 128], strides = [1, 1, 1]} : vector<3x3x128xf32> to vector<1x1x128xf32>
      %65 = vector.shape_cast %64 : vector<1x1x128xf32> to vector<128xf32>
      %66 = vector.shape_cast %65 : vector<128xf32> to vector<1x1x128xf32>
      %67 = vector.broadcast %66 : vector<1x1x128xf32> to vector<8x16x128xf32>
      %68 = arith.mulf %63, %67 : vector<8x16x128xf32>
      %69 = arith.addf %60, %68 : vector<8x16x128xf32>
      %c0_i32_59 = arith.constant 0 : i32
      %c0_i32_60 = arith.constant 0 : i32
      %c0_i32_61 = arith.constant 0 : i32
      %70 = tpu.memref_slice %arg7[%25, %c0_i32_59, %c0_i32_60, %c0_i32_61] : memref<2x10x18x128xf32, #tpu.memory_space<vmem>> -> memref<1x10x18x128xf32, #tpu.memory_space<vmem>>
      %71 = tpu.memref_squeeze %70 : memref<1x10x18x128xf32, #tpu.memory_space<vmem>> -> memref<10x18x128xf32, #tpu.memory_space<vmem>>
      %c1_62 = arith.constant 1 : index
      %c0_63 = arith.constant 0 : index
      %c0_64 = arith.constant 0 : index
      %72 = vector.load %71[%c1_62, %c0_63, %c0_64] : memref<10x18x128xf32, #tpu.memory_space<vmem>>, vector<8x16x128xf32>
      %73 = vector.extract_strided_slice %0 {offsets = [1, 0, 0], sizes = [1, 1, 128], strides = [1, 1, 1]} : vector<3x3x128xf32> to vector<1x1x128xf32>
      %74 = vector.shape_cast %73 : vector<1x1x128xf32> to vector<128xf32>
      %75 = vector.shape_cast %74 : vector<128xf32> to vector<1x1x128xf32>
      %76 = vector.broadcast %75 : vector<1x1x128xf32> to vector<8x16x128xf32>
      %77 = arith.mulf %72, %76 : vector<8x16x128xf32>
      %78 = arith.addf %69, %77 : vector<8x16x128xf32>
      %c0_i32_65 = arith.constant 0 : i32
      %c0_i32_66 = arith.constant 0 : i32
      %c0_i32_67 = arith.constant 0 : i32
      %79 = tpu.memref_slice %arg7[%25, %c0_i32_65, %c0_i32_66, %c0_i32_67] : memref<2x10x18x128xf32, #tpu.memory_space<vmem>> -> memref<1x10x18x128xf32, #tpu.memory_space<vmem>>
      %80 = tpu.memref_squeeze %79 : memref<1x10x18x128xf32, #tpu.memory_space<vmem>> -> memref<10x18x128xf32, #tpu.memory_space<vmem>>
      %c1_68 = arith.constant 1 : index
      %c1_69 = arith.constant 1 : index
      %c0_70 = arith.constant 0 : index
      %81 = vector.load %80[%c1_68, %c1_69, %c0_70] : memref<10x18x128xf32, #tpu.memory_space<vmem>>, vector<8x16x128xf32>
      %82 = vector.extract_strided_slice %0 {offsets = [1, 1, 0], sizes = [1, 1, 128], strides = [1, 1, 1]} : vector<3x3x128xf32> to vector<1x1x128xf32>
      %83 = vector.shape_cast %82 : vector<1x1x128xf32> to vector<128xf32>
      %84 = vector.shape_cast %83 : vector<128xf32> to vector<1x1x128xf32>
      %85 = vector.broadcast %84 : vector<1x1x128xf32> to vector<8x16x128xf32>
      %86 = arith.mulf %81, %85 : vector<8x16x128xf32>
      %87 = arith.addf %78, %86 : vector<8x16x128xf32>
      %c0_i32_71 = arith.constant 0 : i32
      %c0_i32_72 = arith.constant 0 : i32
      %c0_i32_73 = arith.constant 0 : i32
      %88 = tpu.memref_slice %arg7[%25, %c0_i32_71, %c0_i32_72, %c0_i32_73] : memref<2x10x18x128xf32, #tpu.memory_space<vmem>> -> memref<1x10x18x128xf32, #tpu.memory_space<vmem>>
      %89 = tpu.memref_squeeze %88 : memref<1x10x18x128xf32, #tpu.memory_space<vmem>> -> memref<10x18x128xf32, #tpu.memory_space<vmem>>
      %c1_74 = arith.constant 1 : index
      %c2_75 = arith.constant 2 : index
      %c0_76 = arith.constant 0 : index
      %90 = vector.load %89[%c1_74, %c2_75, %c0_76] : memref<10x18x128xf32, #tpu.memory_space<vmem>>, vector<8x16x128xf32>
      %91 = vector.extract_strided_slice %0 {offsets = [1, 2, 0], sizes = [1, 1, 128], strides = [1, 1, 1]} : vector<3x3x128xf32> to vector<1x1x128xf32>
      %92 = vector.shape_cast %91 : vector<1x1x128xf32> to vector<128xf32>
      %93 = vector.shape_cast %92 : vector<128xf32> to vector<1x1x128xf32>
      %94 = vector.broadcast %93 : vector<1x1x128xf32> to vector<8x16x128xf32>
      %95 = arith.mulf %90, %94 : vector<8x16x128xf32>
      %96 = arith.addf %87, %95 : vector<8x16x128xf32>
      %c0_i32_77 = arith.constant 0 : i32
      %c0_i32_78 = arith.constant 0 : i32
      %c0_i32_79 = arith.constant 0 : i32
      %97 = tpu.memref_slice %arg7[%25, %c0_i32_77, %c0_i32_78, %c0_i32_79] : memref<2x10x18x128xf32, #tpu.memory_space<vmem>> -> memref<1x10x18x128xf32, #tpu.memory_space<vmem>>
      %98 = tpu.memref_squeeze %97 : memref<1x10x18x128xf32, #tpu.memory_space<vmem>> -> memref<10x18x128xf32, #tpu.memory_space<vmem>>
      %c2_80 = arith.constant 2 : index
      %c0_81 = arith.constant 0 : index
      %c0_82 = arith.constant 0 : index
      %99 = vector.load %98[%c2_80, %c0_81, %c0_82] : memref<10x18x128xf32, #tpu.memory_space<vmem>>, vector<8x16x128xf32>
      %100 = vector.extract_strided_slice %0 {offsets = [2, 0, 0], sizes = [1, 1, 128], strides = [1, 1, 1]} : vector<3x3x128xf32> to vector<1x1x128xf32>
      %101 = vector.shape_cast %100 : vector<1x1x128xf32> to vector<128xf32>
      %102 = vector.shape_cast %101 : vector<128xf32> to vector<1x1x128xf32>
      %103 = vector.broadcast %102 : vector<1x1x128xf32> to vector<8x16x128xf32>
      %104 = arith.mulf %99, %103 : vector<8x16x128xf32>
      %105 = arith.addf %96, %104 : vector<8x16x128xf32>
      %c0_i32_83 = arith.constant 0 : i32
      %c0_i32_84 = arith.constant 0 : i32
      %c0_i32_85 = arith.constant 0 : i32
      %106 = tpu.memref_slice %arg7[%25, %c0_i32_83, %c0_i32_84, %c0_i32_85] : memref<2x10x18x128xf32, #tpu.memory_space<vmem>> -> memref<1x10x18x128xf32, #tpu.memory_space<vmem>>
      %107 = tpu.memref_squeeze %106 : memref<1x10x18x128xf32, #tpu.memory_space<vmem>> -> memref<10x18x128xf32, #tpu.memory_space<vmem>>
      %c2_86 = arith.constant 2 : index
      %c1_87 = arith.constant 1 : index
      %c0_88 = arith.constant 0 : index
      %108 = vector.load %107[%c2_86, %c1_87, %c0_88] : memref<10x18x128xf32, #tpu.memory_space<vmem>>, vector<8x16x128xf32>
      %109 = vector.extract_strided_slice %0 {offsets = [2, 1, 0], sizes = [1, 1, 128], strides = [1, 1, 1]} : vector<3x3x128xf32> to vector<1x1x128xf32>
      %110 = vector.shape_cast %109 : vector<1x1x128xf32> to vector<128xf32>
      %111 = vector.shape_cast %110 : vector<128xf32> to vector<1x1x128xf32>
      %112 = vector.broadcast %111 : vector<1x1x128xf32> to vector<8x16x128xf32>
      %113 = arith.mulf %108, %112 : vector<8x16x128xf32>
      %114 = arith.addf %105, %113 : vector<8x16x128xf32>
      %c0_i32_89 = arith.constant 0 : i32
      %c0_i32_90 = arith.constant 0 : i32
      %c0_i32_91 = arith.constant 0 : i32
      %115 = tpu.memref_slice %arg7[%25, %c0_i32_89, %c0_i32_90, %c0_i32_91] : memref<2x10x18x128xf32, #tpu.memory_space<vmem>> -> memref<1x10x18x128xf32, #tpu.memory_space<vmem>>
      %116 = tpu.memref_squeeze %115 : memref<1x10x18x128xf32, #tpu.memory_space<vmem>> -> memref<10x18x128xf32, #tpu.memory_space<vmem>>
      %c2_92 = arith.constant 2 : index
      %c2_93 = arith.constant 2 : index
      %c0_94 = arith.constant 0 : index
      %117 = vector.load %116[%c2_92, %c2_93, %c0_94] : memref<10x18x128xf32, #tpu.memory_space<vmem>>, vector<8x16x128xf32>
      %118 = vector.extract_strided_slice %0 {offsets = [2, 2, 0], sizes = [1, 1, 128], strides = [1, 1, 1]} : vector<3x3x128xf32> to vector<1x1x128xf32>
      %119 = vector.shape_cast %118 : vector<1x1x128xf32> to vector<128xf32>
      %120 = vector.shape_cast %119 : vector<128xf32> to vector<1x1x128xf32>
      %121 = vector.broadcast %120 : vector<1x1x128xf32> to vector<8x16x128xf32>
      %122 = arith.mulf %117, %121 : vector<8x16x128xf32>
      %123 = arith.addf %114, %122 : vector<8x16x128xf32>
      %cst_95 = arith.constant 0.000000e+00 : f32
      %124 = vector.broadcast %cst_95 : f32 to vector<8x16x128xf32>
      %125 = arith.maximumf %123, %124 : vector<8x16x128xf32>
      %126 = vector.shape_cast %125 : vector<8x16x128xf32> to vector<128x128xf32>
      %cst_96 = arith.constant dense<0.000000e+00> : vector<128x128xf32>
      %127 = tpu.matmul %126, %3, %cst_96 {dimension_numbers = #tpu.dot_dimension_numbers<[1], [0], [0], [1], [0, 0, 1, 1], [], []>} : vector<128x128xf32>, vector<128x128xf32>, vector<128x128xf32> -> vector<128x128xf32>
      %128 = vector.shape_cast %5 : vector<128xf32> to vector<1x128xf32>
      %129 = vector.broadcast %128 : vector<1x128xf32> to vector<128x128xf32>
      %130 = arith.addf %127, %129 : vector<128x128xf32>
      %cst_97 = arith.constant 0.000000e+00 : f32
      %131 = vector.broadcast %cst_97 : f32 to vector<128x128xf32>
      %132 = arith.maximumf %130, %131 : vector<128x128xf32>
      %c0_i32_98 = arith.constant 0 : i32
      %c0_i32_99 = arith.constant 0 : i32
      %133 = tpu.memref_slice %arg8[%25, %c0_i32_98, %c0_i32_99] : memref<2x128x128xf32, #tpu.memory_space<vmem>> -> memref<1x128x128xf32, #tpu.memory_space<vmem>>
      %134 = tpu.memref_squeeze %133 : memref<1x128x128xf32, #tpu.memory_space<vmem>> -> memref<128x128xf32, #tpu.memory_space<vmem>>
      %c0_100 = arith.constant 0 : index
      %c0_101 = arith.constant 0 : index
      %135 = vector.load %134[%c0_100, %c0_101] : memref<128x128xf32, #tpu.memory_space<vmem>>, vector<128x128xf32>
      tpu.vector_store %134[%c0_100, %c0_101], %132 {strides = array<i32>} : memref<128x128xf32, #tpu.memory_space<vmem>>, vector<128x128xf32>,
      %c0_i32_102 = arith.constant 0 : i32
      %c0_i32_103 = arith.constant 0 : i32
      %136 = tpu.memref_slice %arg8[%25, %c0_i32_102, %c0_i32_103] : memref<2x128x128xf32, #tpu.memory_space<vmem>> -> memref<1x128x128xf32, #tpu.memory_space<vmem>>
      %137 = tpu.memref_squeeze %136 : memref<1x128x128xf32, #tpu.memory_space<vmem>> -> memref<128x128xf32, #tpu.memory_space<vmem>>
      %c0_i32_104 = arith.constant 0 : i32
      %c0_i32_105 = arith.constant 0 : i32
      %138 = tpu.memref_slice %arg6[%arg0, %arg11, %c0_i32_104, %c0_i32_105] : memref<2x2x128x128xf32, #tpu.memory_space<any>> -> memref<1x1x128x128xf32, #tpu.memory_space<any>>
      %139 = tpu.memref_squeeze %138 : memref<1x1x128x128xf32, #tpu.memory_space<any>> -> memref<128x128xf32, #tpu.memory_space<any>>
      %140 = tpu.memref_slice %arg10[%25] : memref<2x!tpu.dma_semaphore, #tpu.memory_space<semaphore_mem>> -> memref<1x!tpu.dma_semaphore, #tpu.memory_space<semaphore_mem>>
      %141 = tpu.memref_squeeze %140 : memref<1x!tpu.dma_semaphore, #tpu.memory_space<semaphore_mem>> -> memref<!tpu.dma_semaphore, #tpu.memory_space<semaphore_mem>>
      tpu.enqueue_dma source(%137 : memref<128x128xf32, #tpu.memory_space<vmem>>) target(%139 : memref<128x128xf32, #tpu.memory_space<any>>) target_semaphore(%141 : memref<!tpu.dma_semaphore, #tpu.memory_space<semaphore_mem>>)
    }
    %c2_i32_16 = arith.constant 2 : i32
    %c0_i32_17 = arith.constant 0 : i32
    %c0_i32_18 = arith.constant 0 : i32
    %c0_i32_19 = arith.constant 0 : i32
    %c0_i32_20 = arith.constant 0 : i32
    %c0_i32_21 = arith.constant 0 : i32
    %13 = tpu.memref_slice %arg8[%c0_i32_17, %c0_i32_20, %c0_i32_21] : memref<2x128x128xf32, #tpu.memory_space<vmem>> -> memref<1x128x128xf32, #tpu.memory_space<vmem>>
    %14 = tpu.memref_squeeze %13 : memref<1x128x128xf32, #tpu.memory_space<vmem>> -> memref<128x128xf32, #tpu.memory_space<vmem>>
    %c0_i32_22 = arith.constant 0 : i32
    %c0_i32_23 = arith.constant 0 : i32
    %15 = tpu.memref_slice %arg6[%arg0, %c0_i32_18, %c0_i32_22, %c0_i32_23] : memref<2x2x128x128xf32, #tpu.memory_space<any>> -> memref<1x1x128x128xf32, #tpu.memory_space<any>>
    %16 = tpu.memref_squeeze %15 : memref<1x1x128x128xf32, #tpu.memory_space<any>> -> memref<128x128xf32, #tpu.memory_space<any>>
    %17 = tpu.memref_slice %arg10[%c0_i32_19] : memref<2x!tpu.dma_semaphore, #tpu.memory_space<semaphore_mem>> -> memref<1x!tpu.dma_semaphore, #tpu.memory_space<semaphore_mem>>
    %18 = tpu.memref_squeeze %17 : memref<1x!tpu.dma_semaphore, #tpu.memory_space<semaphore_mem>> -> memref<!tpu.dma_semaphore, #tpu.memory_space<semaphore_mem>>
    tpu.wait_dma2 semaphore(%18 : memref<!tpu.dma_semaphore, #tpu.memory_space<semaphore_mem>>) src(%14 : memref<128x128xf32, #tpu.memory_space<vmem>>) dst(%16 : memref<128x128xf32, #tpu.memory_space<any>>)
    %c1_i32_24 = arith.constant 1 : i32
    %c0_i32_25 = arith.constant 0 : i32
    %c1_i32_26 = arith.constant 1 : i32
    %c0_i32_27 = arith.constant 0 : i32
    %c0_i32_28 = arith.constant 0 : i32
    %19 = tpu.memref_slice %arg8[%c1_i32_24, %c0_i32_27, %c0_i32_28] : memref<2x128x128xf32, #tpu.memory_space<vmem>> -> memref<1x128x128xf32, #tpu.memory_space<vmem>>
    %20 = tpu.memref_squeeze %19 : memref<1x128x128xf32, #tpu.memory_space<vmem>> -> memref<128x128xf32, #tpu.memory_space<vmem>>
    %c0_i32_29 = arith.constant 0 : i32
    %c0_i32_30 = arith.constant 0 : i32
    %21 = tpu.memref_slice %arg6[%arg0, %c0_i32_25, %c0_i32_29, %c0_i32_30] : memref<2x2x128x128xf32, #tpu.memory_space<any>> -> memref<1x1x128x128xf32, #tpu.memory_space<any>>
    %22 = tpu.memref_squeeze %21 : memref<1x1x128x128xf32, #tpu.memory_space<any>> -> memref<128x128xf32, #tpu.memory_space<any>>
    %23 = tpu.memref_slice %arg10[%c1_i32_26] : memref<2x!tpu.dma_semaphore, #tpu.memory_space<semaphore_mem>> -> memref<1x!tpu.dma_semaphore, #tpu.memory_space<semaphore_mem>>
    %24 = tpu.memref_squeeze %23 : memref<1x!tpu.dma_semaphore, #tpu.memory_space<semaphore_mem>> -> memref<!tpu.dma_semaphore, #tpu.memory_space<semaphore_mem>>
    tpu.wait_dma2 semaphore(%24 : memref<!tpu.dma_semaphore, #tpu.memory_space<semaphore_mem>>) src(%20 : memref<128x128xf32, #tpu.memory_space<vmem>>) dst(%22 : memref<128x128xf32, #tpu.memory_space<any>>)
    return
  }
  func.func @transform_1(%arg0: i32) -> (i32, i32, i32) {
    %c0_i32 = arith.constant 0 : i32
    %c0_i32_0 = arith.constant 0 : i32
    %c0_i32_1 = arith.constant 0 : i32
    %c0_i32_2 = arith.constant 0 : i32
    return %c0_i32, %c0_i32_0, %c0_i32_1 : i32, i32, i32
  }
  func.func @transform_2(%arg0: i32) -> (i32, i32) {
    %c0_i32 = arith.constant 0 : i32
    %c0_i32_0 = arith.constant 0 : i32
    %c0_i32_1 = arith.constant 0 : i32
    return %c0_i32, %c0_i32_0 : i32, i32
  }
  func.func @transform_3(%arg0: i32) -> (i32, i32) {
    %c0_i32 = arith.constant 0 : i32
    %c0_i32_0 = arith.constant 0 : i32
    %c0_i32_1 = arith.constant 0 : i32
    return %c0_i32, %c0_i32_0 : i32, i32
  }
  func.func @transform_4(%arg0: i32) -> (i32, i32) {
    %c0_i32 = arith.constant 0 : i32
    %c0_i32_0 = arith.constant 0 : i32
    %c0_i32_1 = arith.constant 0 : i32
    return %c0_i32, %c0_i32_0 : i32, i32
  }
}

</mosaic_0001>

<bundles_post_ra>
// kernel: tpu_custom_call.1
= control target key start
LH: loop header
LB: loop body
LE: loop exit
PB: predicated region body
PF: predicated region fallthrough
CT: control target
= control target key end

     0   :  { %s1606_s18 = smov 0   ;;  %s2456_s0 = inlined_call_operand.vmem [shape: f32[2,18,18,128], index: 0, kind: input, shape index: {}]   ;;  %s2457_s1 = inlined_call_operand.vmem [shape: f32[3,3,128], index: 1, kind: input, shape index: {}]   ;;  %s2458_s2 = inlined_call_operand.vmem [shape: f32[1,128], index: 2, kind: input, shape index: {}]   ;;  %s2459_s3 = inlined_call_operand.vmem [shape: f32[128,128], index: 3, kind: input, shape index: {}]   ;;  %s2460_s4 = inlined_call_operand.vmem [shape: f32[1,128], index: 4, kind: input, shape index: {}]   ;;  %s2461_s5 = inlined_call_operand.hbm [shape: f32[2,2,128,128], index: 5, kind: output, shape index: {}]  }
   0x1 LB: > { %s1214_s19 = sadd.s32 4294967295, %s1569_s18   ;;  %p1218_p0 = scmp.lt.s32.totalorder %s1569_s18, 1  ;;  %s1569_s18 = sphi %s1606_s18, %s15_s18  }
   0x3   : > { %98 = sbr.rel (%p1218_p0) target bundleno = 396 (0x18c), region = 36 }
   0x8   : > { %v1616_v0 = vld [vmem:[%s2457_s1] sm:$0x7]  ;;  %v1621_v1 = vld [vmem:[%s2457_s1 + $0x4] sm:$0x7]  ;;  %v1626_v2 = vld [vmem:[%s2457_s1 + $0x8] sm:$0x7] }
   0x9   : > { %2487 = vst [vmem:[#allocation16_spill] sm:$0xff] %v1616_v0  ;;  %2488 = vst [vmem:[#allocation17_spill] sm:$0xff] %v1621_v1  ;;  %v1631_v3 = vld [vmem:[%s2458_s2] ss:$0 sm:$0xff]  ;;  %v1641_v5 = vld [vmem:[%s2459_s3 + $0x8] sm:$0xff]  ;;  %s1645_s7 = smul.u32 432, %s1214_s19 }
   0xa   : > { %2489 = vst [vmem:[#allocation18_spill] sm:$0xff] %v1626_v2  ;;  %v1636_v4 = vld [vmem:[%s2459_s3] sm:$0xff]  ;;  %2491 = vst [vmem:[#allocation20_spill] sm:$0xff] %v1641_v5  ;;  %v1650_v6 = vld [vmem:[%s2459_s3 + $0x10] sm:$0xff] }
   0xb   : > { %2490 = vst [vmem:[#allocation19_spill] sm:$0xff] %v1636_v4  ;;  %2492 = vst [vmem:[#allocation21_spill] sm:$0xff] %v1650_v6  ;;  %v1655_v7 = vld [vmem:[%s2459_s3 + $0x18] sm:$0xff]  ;;  %v1660_v8 = vld [vmem:[%s2459_s3 + $0x20] sm:$0xff]  ;;  %s1696_s30 = scalar_lea.vmem %s2456_s0, %s1645_s7 }
   0xc   : > { %2493 = vst [vmem:[#allocation22_spill] sm:$0xff] %v1655_v7  ;;  %2494 = vst [vmem:[#allocation23_spill] sm:$0xff] %v1660_v8  ;;  %v1665_v9 = vld [vmem:[%s2459_s3 + $0x28] sm:$0xff]  ;;  %v1670_v10 = vld [vmem:[%s2459_s3 + $0x30] sm:$0xff] }
   0xd   : > { %2495 = vst [vmem:[#allocation24_spill] sm:$0xff] %v1665_v9  ;;  %2496 = vst [vmem:[#allocation25_spill] sm:$0xff] %v1670_v10  ;;  %v1675_v11 = vld [vmem:[%s2459_s3 + $0x38] sm:$0xff]  ;;  %v1680_v12 = vld [vmem:[%s2459_s3 + $0x40] sm:$0xff] }
   0xe   : > { %2497 = vst [vmem:[#allocation26_spill] sm:$0xff] %v1675_v11  ;;  %2498 = vst [vmem:[#allocation27_spill] sm:$0xff] %v1680_v12  ;;  %v1685_v13 = vld [vmem:[%s2459_s3 + $0x48] sm:$0xff]  ;;  %v1690_v14 = vld [vmem:[%s2459_s3 + $0x50] sm:$0xff] }
   0xf   : > { %2499 = vst [vmem:[#allocation28_spill] sm:$0xff] %v1685_v13  ;;  %2500 = vst [vmem:[#allocation29_spill] sm:$0xff] %v1690_v14  ;;  %v1701_v15 = vld [vmem:[%s2459_s3 + $0x58] sm:$0xff]  ;;  %v1706_v16 = vld [vmem:[%s2459_s3 + $0x60] sm:$0xff] }
  0x10   : > { %2501 = vst [vmem:[#allocation30_spill] sm:$0xff] %v1701_v15  ;;  %2502 = vst [vmem:[#allocation31_spill] sm:$0xff] %v1706_v16  ;;  %v1711_v17 = vld [vmem:[%s2459_s3 + $0x68] sm:$0xff]  ;;  %v1716_v18 = vld [vmem:[%s2459_s3 + $0x70] sm:$0xff] }
  0x11   : > { %2503 = vst [vmem:[#allocation32_spill] sm:$0xff] %v1711_v17  ;;  %2504 = vst [vmem:[#allocation33_spill] sm:$0xff] %v1716_v18  ;;  %v1721_v19 = vld [vmem:[%s2459_s3 + $0x78] sm:$0xff]  ;;  %v1726_v20 = vld [vmem:[%s2460_s4] ss:$0 sm:$0xff] }
  0x12   : > { %2505 = vst [vmem:[#allocation34_spill] sm:$0xff] %v1721_v19  ;;  %2506 = vst [vmem:[#allocation35_spill] sm:$0xff] %v1726_v20  ;;  %v187_v21 = vld [vmem:[%s1696_s30] sm:$0xff]  ;;  %v189_v22 = vld [vmem:[%s1696_s30 + $0x8] sm:$0xff] }
  0x13   : > { %v191_v23 = vld [vmem:[%s1696_s30 + $0x18] sm:$0xff]  ;;  %188 = vst [vmem:[#allocation2] sm:$0xff] %v187_v21  ;;  %190 = vst [vmem:[#allocation2 + $0x8] sm:$0xff] %v189_v22  ;;  %v193_v24 = vld [vmem:[%s1696_s30 + $0x20] sm:$0xff] }
  0x14   : > { %192 = vst [vmem:[#allocation2 + $0x18] sm:$0xff] %v191_v23  ;;  %v195_v25 = vld [vmem:[%s1696_s30 + $0x30] sm:$0xff]  ;;  %v197_v26 = vld [vmem:[%s1696_s30 + $0x38] sm:$0xff]  ;;  %194 = vst [vmem:[#allocation2 + $0x20] sm:$0xff] %v193_v24 }
  0x15   : > { %196 = vst [vmem:[#allocation2 + $0x30] sm:$0xff] %v195_v25  ;;  %198 = vst [vmem:[#allocation2 + $0x38] sm:$0xff] %v197_v26  ;;  %v199_v27 = vld [vmem:[%s1696_s30 + $0x48] sm:$0xff]  ;;  %v201_v28 = vld [vmem:[%s1696_s30 + $0x50] sm:$0xff] }
  0x16   : > { %v203_v29 = vld [vmem:[%s1696_s30 + $0x60] sm:$0xff]  ;;  %200 = vst [vmem:[#allocation2 + $0x48] sm:$0xff] %v199_v27  ;;  %202 = vst [vmem:[#allocation2 + $0x50] sm:$0xff] %v201_v28  ;;  %v205_v30 = vld [vmem:[%s1696_s30 + $0x68] sm:$0xff] }
  0x17   : > { %204 = vst [vmem:[#allocation2 + $0x60] sm:$0xff] %v203_v29  ;;  %v207_v31 = vld [vmem:[%s1696_s30 + $0x78] sm:$0xff]  ;;  %v209_v32 = vld [vmem:[%s1696_s30 + $0x80] sm:$0xff]  ;;  %206 = vst [vmem:[#allocation2 + $0x68] sm:$0xff] %v205_v30 }
  0x18   : > { %208 = vst [vmem:[#allocation2 + $0x78] sm:$0xff] %v207_v31  ;;  %210 = vst [vmem:[#allocation2 + $0x80] sm:$0xff] %v209_v32  ;;  %v211_v33 = vld [vmem:[%s1696_s30 + $0x90] sm:$0xff]  ;;  %v213_v34 = vld [vmem:[%s1696_s30 + $0x98] sm:$0xff] }
  0x19   : > { %v215_v35 = vld [vmem:[%s1696_s30 + $0xa8] sm:$0xff]  ;;  %212 = vst [vmem:[#allocation2 + $0x90] sm:$0xff] %v211_v33  ;;  %214 = vst [vmem:[#allocation2 + $0x98] sm:$0xff] %v213_v34  ;;  %v217_v36 = vld [vmem:[%s1696_s30 + $0xb0] sm:$0xff] }
  0x1a   : > { %216 = vst [vmem:[#allocation2 + $0xa8] sm:$0xff] %v215_v35  ;;  %v219_v37 = vld [vmem:[%s1696_s30 + $0xc0] sm:$0xff]  ;;  %v221_v38 = vld [vmem:[%s1696_s30 + $0xc8] sm:$0xff]  ;;  %218 = vst [vmem:[#allocation2 + $0xb0] sm:$0xff] %v217_v36 }
  0x1b   : > { %220 = vst [vmem:[#allocation2 + $0xc0] sm:$0xff] %v219_v37  ;;  %222 = vst [vmem:[#allocation2 + $0xc8] sm:$0xff] %v221_v38  ;;  %v223_v39 = vld [vmem:[%s1696_s30 + $0xd8] sm:$0xff]  ;;  %v225_v40 = vld [vmem:[%s1696_s30 + $0xe0] sm:$0xff] }
  0x1c   : > { %v1219_v41 = vld [vmem:[%s1696_s30 + $0x10] sm:$0x3]  ;;  %224 = vst [vmem:[#allocation2 + $0xd8] sm:$0xff] %v223_v39  ;;  %226 = vst [vmem:[#allocation2 + $0xe0] sm:$0xff] %v225_v40  ;;  %v1220_v42 = vld [vmem:[%s1696_s30 + $0x28] sm:$0x3] }
  0x1d   : > { %238 = vst [vmem:[#allocation2 + $0x10] sm:$0x3] %v1219_v41  ;;  %v1221_v43 = vld [vmem:[%s1696_s30 + $0x40] sm:$0x3]  ;;  %v1222_v44 = vld [vmem:[%s1696_s30 + $0x58] sm:$0x3] }
  0x1e   : > { %240 = vst [vmem:[#allocation2 + $0x28] sm:$0x3] %v1220_v42  ;;  %242 = vst [vmem:[#allocation2 + $0x40] sm:$0x3] %v1221_v43  ;;  %v1223_v45 = vld [vmem:[%s1696_s30 + $0x70] sm:$0x3] }
  0x1f   : > { %244 = vst [vmem:[#allocation2 + $0x58] sm:$0x3] %v1222_v44  ;;  %v1224_v46 = vld [vmem:[%s1696_s30 + $0x88] sm:$0x3]  ;;  %v1225_v47 = vld [vmem:[%s1696_s30 + $0xa0] sm:$0x3] }
  0x20   : > { %246 = vst [vmem:[#allocation2 + $0x70] sm:$0x3] %v1223_v45  ;;  %248 = vst [vmem:[#allocation2 + $0x88] sm:$0x3] %v1224_v46  ;;  %v1226_v48 = vld [vmem:[%s1696_s30 + $0xb8] sm:$0x3] }
  0x21   : > { %250 = vst [vmem:[#allocation2 + $0xa0] sm:$0x3] %v1225_v47  ;;  %v1227_v49 = vld [vmem:[%s1696_s30 + $0xd0] sm:$0x3]  ;;  %v1228_v50 = vld [vmem:[%s1696_s30 + $0xe8] sm:$0x3] }
  0x22   : > { %252 = vst [vmem:[#allocation2 + $0xb8] sm:$0x3] %v1226_v48  ;;  %254 = vst [vmem:[#allocation2 + $0xd0] sm:$0x3] %v1227_v49 }
  0x23   : > { %256 = vst [vmem:[#allocation2 + $0xe8] sm:$0x3] %v1228_v50 }
  0x24   : > { %260 = vsyncadd [#allocation4], 2880  ;;  %s1758_s21 = smov 0  }
  0x25 LB: >> { %v2507_v19 = vld [vmem:[#allocation34_spill] sm:$0xff]  ;;  %v2508_v18 = vld [vmem:[#allocation33_spill] sm:$0xff]  ;;  %v2509_v17 = vld [vmem:[#allocation32_spill] sm:$0xff]  ;;  %s1764_s22 = sand.u32 1, %s1573_s21  ;;  %s1573_s21 = sphi %s1758_s21, %s2538_s21  }
  0x26   : >> { %v2510_v16 = vld [vmem:[#allocation31_spill] sm:$0xff]  ;;  %v2511_v15 = vld [vmem:[#allocation30_spill] sm:$0xff]  ;;  %v2512_v14 = vld [vmem:[#allocation29_spill] sm:$0xff]  ;;  %s268_s23 = smul.u32 240, %s1764_s22  ;;  %s270_s25 = scalar_lea.sflag [#allocation4], %s1764_s22 }
  0x27   : >> { %v2513_v13 = vld [vmem:[#allocation28_spill] sm:$0xff]  ;;  %v2514_v12 = vld [vmem:[#allocation27_spill] sm:$0xff]  ;;  %v2518_v6 = vld [vmem:[#allocation21_spill] sm:$0xff] }
  0x28   : >> { %v2515_v5 = vld [vmem:[#allocation20_spill] sm:$0xff]  ;;  %v2516_v4 = vld [vmem:[#allocation19_spill] sm:$0xff]  ;;  %v2519_v7 = vld [vmem:[#allocation22_spill] sm:$0xff]  ;;  %s1767_s24 = scalar_lea.vmem [#allocation2], %s268_s23 }
  0x29   : >> { %v2517_v8 = vld [vmem:[#allocation23_spill] sm:$0xff]  ;;  %v2520_v11 = vld [vmem:[#allocation26_spill] sm:$0xff]  ;;  %v2521_v9 = vld [vmem:[#allocation24_spill] sm:$0xff] }
  0x2a   : >> { %v2522_v10 = vld [vmem:[#allocation25_spill] sm:$0xff]  ;;  %v2523_v2 = vld [vmem:[#allocation18_spill] sm:$0xff]  ;;  %v2525_v0 = vld [vmem:[#allocation16_spill] sm:$0xff] }
  0x2b   : >> { %v2524_v1 = vld [vmem:[#allocation17_spill] sm:$0xff] }
  0x2c   : >> { %1557 = dma.done.wait %s270_s25, 2880 }
  0x2d   : >> { %1558 = vsyncadd %s270_s25, 4294964416  ;;  %s275_s26 = sadd.s32 1, %s1573_s21  }
  0x2e   : >> { %p1773_p1 = scmp.ge.s32.totalorder %s275_s26, 2 }
  0x2f   : >> { %s280_s28 = ssub.s32 (!%p1773_p1), 1, %s1764_s22  ;;  %s1160_s29 = smul.u32 (!%p1773_p1), 192, %s1573_s21 }
  0x30   : >> { %279 = sbr.rel (%p1773_p1) target bundleno = 71 (0x47), region = 84  ;;  %s287_s12 = scalar_lea.sflag (!%p1773_p1), [#allocation4], %s280_s28 }
  0x31   : >> { %s285_s30 = smul.u32 (!%p1773_p1), 240, %s280_s28  ;;  %s1162_s6 = sadd.s32 (!%p1773_p1), %s1160_s29, %s1645_s7 }
  0x32   : >> { %s1787_s10 = scalar_lea.vmem (!%p1773_p1), %s2456_s0, %s1162_s6 }
  0x33   : >> { %s1792_s11 = scalar_lea.vmem (!%p1773_p1), [#allocation2], %s285_s30 }
  0x35   : >> { %v1231_v51 = vld [vmem:[%s1787_s10 + $0xc0] sm:$0xff]  ;;  %v1232_v52 = vld [vmem:[%s1787_s10 + $0xc8] sm:$0xff]  ;;  %v1233_v53 = vld [vmem:[%s1787_s10 + $0xd8] sm:$0xff] }
  0x36   : >> { %345 = vst [vmem:[%s1792_s11] sm:$0xff] %v1231_v51  ;;  %347 = vst [vmem:[%s1792_s11 + $0x8] sm:$0xff] %v1232_v52  ;;  %v1234_v54 = vld [vmem:[%s1787_s10 + $0xe0] sm:$0xff]  ;;  %v1235_v55 = vld [vmem:[%s1787_s10 + $0xf0] sm:$0xff] }
  0x37   : >> { %349 = vst [vmem:[%s1792_s11 + $0x18] sm:$0xff] %v1233_v53  ;;  %v1236_v56 = vld [vmem:[%s1787_s10 + $0xf8] sm:$0xff]  ;;  %351 = vst [vmem:[%s1792_s11 + $0x20] sm:$0xff] %v1234_v54  ;;  %v1237_v57 = vld [vmem:[%s1787_s10 + $0x108] sm:$0xff] }
  0x38   : >> { %353 = vst [vmem:[%s1792_s11 + $0x30] sm:$0xff] %v1235_v55  ;;  %355 = vst [vmem:[%s1792_s11 + $0x38] sm:$0xff] %v1236_v56  ;;  %v1238_v58 = vld [vmem:[%s1787_s10 + $0x110] sm:$0xff]  ;;  %v1239_v59 = vld [vmem:[%s1787_s10 + $0x120] sm:$0xff] }
  0x39   : >> { %357 = vst [vmem:[%s1792_s11 + $0x48] sm:$0xff] %v1237_v57  ;;  %359 = vst [vmem:[%s1792_s11 + $0x50] sm:$0xff] %v1238_v58  ;;  %v1240_v60 = vld [vmem:[%s1787_s10 + $0x128] sm:$0xff]  ;;  %v1241_v61 = vld [vmem:[%s1787_s10 + $0x138] sm:$0xff] }
  0x3a   : >> { %361 = vst [vmem:[%s1792_s11 + $0x60] sm:$0xff] %v1239_v59  ;;  %v1242_v62 = vld [vmem:[%s1787_s10 + $0x140] sm:$0xff]  ;;  %363 = vst [vmem:[%s1792_s11 + $0x68] sm:$0xff] %v1240_v60  ;;  %v1243_v63 = vld [vmem:[%s1787_s10 + $0x150] sm:$0xff] }
  0x3b   : >> { %365 = vst [vmem:[%s1792_s11 + $0x78] sm:$0xff] %v1241_v61  ;;  %367 = vst [vmem:[%s1792_s11 + $0x80] sm:$0xff] %v1242_v62  ;;  %v1244_v21 = vld [vmem:[%s1787_s10 + $0x158] sm:$0xff]  ;;  %v1245_v22 = vld [vmem:[%s1787_s10 + $0x168] sm:$0xff] }
  0x3c   : >> { %369 = vst [vmem:[%s1792_s11 + $0x90] sm:$0xff] %v1243_v63  ;;  %371 = vst [vmem:[%s1792_s11 + $0x98] sm:$0xff] %v1244_v21  ;;  %v1246_v23 = vld [vmem:[%s1787_s10 + $0x170] sm:$0xff]  ;;  %v1247_v24 = vld [vmem:[%s1787_s10 + $0x180] sm:$0xff] }
  0x3d   : >> { %373 = vst [vmem:[%s1792_s11 + $0xa8] sm:$0xff] %v1245_v22  ;;  %v1248_v25 = vld [vmem:[%s1787_s10 + $0x188] sm:$0xff]  ;;  %375 = vst [vmem:[%s1792_s11 + $0xb0] sm:$0xff] %v1246_v23  ;;  %v1249_v26 = vld [vmem:[%s1787_s10 + $0x198] sm:$0xff] }
  0x3e   : >> { %377 = vst [vmem:[%s1792_s11 + $0xc0] sm:$0xff] %v1247_v24  ;;  %379 = vst [vmem:[%s1792_s11 + $0xc8] sm:$0xff] %v1248_v25  ;;  %v1250_v27 = vld [vmem:[%s1787_s10 + $0x1a0] sm:$0xff]  ;;  %v1251_v28 = vld [vmem:[%s1787_s10 + $0xd0] sm:$0x3] }
  0x3f   : >> { %381 = vst [vmem:[%s1792_s11 + $0xd8] sm:$0xff] %v1249_v26  ;;  %383 = vst [vmem:[%s1792_s11 + $0xe0] sm:$0xff] %v1250_v27  ;;  %v1253_v29 = vld [vmem:[%s1787_s10 + $0xe8] sm:$0x3]  ;;  %v1255_v30 = vld [vmem:[%s1787_s10 + $0x100] sm:$0x3] }
  0x40   : >> { %1252 = vst [vmem:[%s1792_s11 + $0x10] sm:$0x3] %v1251_v28  ;;  %v1257_v31 = vld [vmem:[%s1787_s10 + $0x118] sm:$0x3]  ;;  %1254 = vst [vmem:[%s1792_s11 + $0x28] sm:$0x3] %v1253_v29 }
  0x41   : >> { %1256 = vst [vmem:[%s1792_s11 + $0x40] sm:$0x3] %v1255_v30  ;;  %1258 = vst [vmem:[%s1792_s11 + $0x58] sm:$0x3] %v1257_v31  ;;  %v1259_v32 = vld [vmem:[%s1787_s10 + $0x130] sm:$0x3] }
  0x42   : >> { %v1261_v33 = vld [vmem:[%s1787_s10 + $0x148] sm:$0x3]  ;;  %v1263_v34 = vld [vmem:[%s1787_s10 + $0x160] sm:$0x3]  ;;  %1260 = vst [vmem:[%s1792_s11 + $0x70] sm:$0x3] %v1259_v32 }
  0x43   : >> { %1262 = vst [vmem:[%s1792_s11 + $0x88] sm:$0x3] %v1261_v33  ;;  %1264 = vst [vmem:[%s1792_s11 + $0xa0] sm:$0x3] %v1263_v34  ;;  %v1265_v35 = vld [vmem:[%s1787_s10 + $0x178] sm:$0x3] }
  0x44   : >> { %v1267_v36 = vld [vmem:[%s1787_s10 + $0x190] sm:$0x3]  ;;  %v1269_v37 = vld [vmem:[%s1787_s10 + $0x1a8] sm:$0x3]  ;;  %1266 = vst [vmem:[%s1792_s11 + $0xb8] sm:$0x3] %v1265_v35 }
  0x45   : >> { %1268 = vst [vmem:[%s1792_s11 + $0xd0] sm:$0x3] %v1267_v36  ;;  %1270 = vst [vmem:[%s1792_s11 + $0xe8] sm:$0x3] %v1269_v37 }
  0x46   : >> { %417 = vsyncadd %s287_s12, 2880 }
  0x47 PF: >> { %p1510_p2 = scmp.ge.s32.totalorder %s1573_s21, 2  ;;  %s1855_s13 = scalar_lea.sflag [#allocation5], %s1764_s22  ;;  %1420 = vmatprep.subr.mxu0 %v2507_v19  ;;  %1476 = vmatprep.subr.mxu1 %v2507_v19 }
  0x49   : >> { %1560 = dma.done.wait (%p1510_p2), %s1855_s13, 2048 }
  0x4a   : >> { %1562 = vsyncadd (%p1510_p2), %s1855_s13, 4294965248  ;;  %v449_v38 = vlaneseq  ;;  %1421 = vmatpush3.msra.mxu0 %v2507_v19  ;;  %1492 = vmatpush3.msra.mxu1 %v2507_v19  ;;  %s1380_s14 = sshll.u32 %s1764_s22, 7  ;;  %s1381_s16 = sshll.u32 %s1573_s21, 7 }
  0x4b   : >> { %1422 = vmatprep.subr.mxu0 %v2508_v18  ;;  %1477 = vmatprep.subr.mxu1 %v2508_v18  ;;  %s2401_s15 = scalar_lea.vmem [#allocation3], %s1380_s14  ;;  %s1382_s17 = sshll.u32 %s1214_s19, 8 }
  0x4c   : >> { %v450_v39 = vshrl.u32 %v449_v38, 7  ;;  %1423 = vmatpush3.msra.mxu0 %v2508_v18  ;;  %1493 = vmatpush3.msra.mxu1 %v2508_v18  ;;  %v433_v46 = vld [vmem:[%s1767_s24] sm:$0xff]  ;;  %v1921_v60 = vld [vmem:[%s1767_s24 + $0x18] sm:$0xff]  ;;  %v1948_v27 = vld [vmem:[%s1767_s24 + $0x30] sm:$0xff]  ;;  %s1106_s20 = sadd.s32 %s1382_s17, %s1381_s16  ;;  %s1117_s23 = sshll.u32 %s2401_s15, 4  ;;  %s1118_s23 = int_to_ptr.vmem [resolvable:$true] %s1117_s23 }
  0x4d   : >> { %1424 = vmatprep.subr.mxu0 %v2509_v17  ;;  %1478 = vmatprep.subr.mxu1 %v2509_v17  ;;  %v485_v47 = vld [vmem:[%s1767_s24 + $0x1] sm:$0xff]  ;;  %v1935_v23 = vld [vmem:[%s1767_s24 + $0x19] sm:$0xff]  ;;  %v1951_v28 = vld [vmem:[%s1767_s24 + $0x31] sm:$0xff]  ;;  %s1383_s22 = sshll.u32 %s1106_s20, 4  ;;  %s1527_s29 = scalar_lea.vmem %s1118_s23, 2048 }
  0x4e   : >> { %v451_v40 = vsub.s32 0, %v450_v39  ;;  %v503_v41 = vsub.s32 1, %v450_v39  ;;  %v555_v42 = vsub.s32 2, %v450_v39  ;;  %1425 = vmatpush3.msra.mxu0 %v2509_v17  ;;  %1494 = vmatpush3.msra.mxu1 %v2509_v17  ;;  %v537_v48 = vld [vmem:[%s1767_s24 + $0x2] sm:$0xff]  ;;  %v1945_v26 = vld [vmem:[%s1767_s24 + $0x1a] sm:$0xff]  ;;  %v1972_v38 = vld [vmem:[%s1767_s24 + $0x32] sm:$0xff]  ;;  %s1108_s28 = scalar_lea.hbm %s2461_s5, %s1383_s22  ;;  %p1528_p3 = scmp.ne.s32.totalorder %s1118_s23, %s1527_s29 }
  0x4f   : >> { %1426 = vmatprep.subr.mxu0 %v2510_v16  ;;  %1479 = vmatprep.subr.mxu1 %v2510_v16  ;;  %v1910_v57 = vld [vmem:[%s1767_s24 + $0x60] sm:$0xff]  ;;  %v1963_v34 = vld [vmem:[%s1767_s24 + $0x78] sm:$0xff]  ;;  %v434_v35 = vld [vmem:[%s1767_s24 + $0x8] sm:$0xff]  ;;  %s1575_s30 = smov [#allocation3]  }
  0x50   : >> { %v1874_v43 = vrot.slane %v2525_v0, %v451_v40  ;;  %v1877_v44 = vrot.slane %v2525_v0, %v503_v41  ;;  %v1880_v45 = vrot.slane %v2525_v0, %v555_v42  ;;  %1427 = vmatpush3.msra.mxu0 %v2510_v16  ;;  %1495 = vmatpush3.msra.mxu1 %v2510_v16  ;;  %v1913_v58 = vld [vmem:[%s1767_s24 + $0x61] sm:$0xff]  ;;  %v486_v36 = vld [vmem:[%s1767_s24 + $0x9] sm:$0xff]  ;;  %v2195_v20 = vld [vmem:[%s1767_s24 + $0x51] sm:$0xff]  ;;  %s1529_s6 = sshll.u32 %s1575_s30, 4  ;;  %s1530_s6 = int_to_ptr.vmem [resolvable:$false] %s1529_s6 }
  0x51   : >> { %1428 = vmatprep.subr.mxu0 %v2511_v15  ;;  %1480 = vmatprep.subr.mxu1 %v2511_v15  ;;  %v1892_v51 = vrot.slane %v2524_v1, %v451_v40  ;;  %v1897_v52 = vrot.slane %v2524_v1, %v503_v41  ;;  %v1900_v53 = vrot.slane %v2524_v1, %v555_v42  ;;  %v1916_v59 = vld [vmem:[%s1767_s24 + $0x62] sm:$0xff]  ;;  %s1531_s8 = scalar_lea.vmem %s1530_s6, 4096  ;;  %p1532_p4 = scmp.lt.s32.totalorder %s1118_s23, %s1530_s6 }
  0x52   : >> { %v453_v49 = vmul.f32 %v1874_v43, %v433_v46  ;;  %v505_v50 = vmul.f32 %v1877_v44, %v485_v47  ;;  %1429 = vmatpush3.msra.mxu0 %v2511_v15  ;;  %1496 = vmatpush3.msra.mxu1 %v2511_v15  ;;  %v557_v55 = vmul.f32 %v1880_v45, %v537_v48  ;;  %v538_v48 = vld [vmem:[%s1767_s24 + $0xa] sm:$0xff]  ;;  %p1533_p5 = scmp.lt.s32.totalorder %s1531_s8, %s1527_s29 }
  0x53   : >> { %1430 = vmatprep.subr.mxu0 %v2512_v14  ;;  %1481 = vmatprep.subr.mxu1 %v2512_v14  ;;  %v1907_v56 = vrot.slane %v2523_v2, %v451_v40  ;;  %v1924_v61 = vrot.slane %v2523_v2, %v503_v41  ;;  %v461_v62 = vmul.f32 %v1874_v43, %v1910_v57  ;;  %v1977_v41 = vld [vmem:[%s1767_s24 + $0x79] sm:$0xff]  ;;  %v2025_v0 = vld [vmem:[%s1767_s24 + $0x69] sm:$0xff] }
  0x54   : >> { %v469_v54 = vadd.f32 %v1631_v3, %v453_v49  ;;  %1431 = vmatpush3.msra.mxu0 %v2512_v14  ;;  %1497 = vmatpush3.msra.mxu1 %v2512_v14  ;;  %v513_v63 = vmul.f32 %v1877_v44, %v1913_v58  ;;  %v610_v22 = vmul.f32 %v1921_v60, %v1892_v51  ;;  %p1534_p6 = por %p1533_p5, %p1532_p4 }
  0x55   : >> { %1432 = vmatprep.subr.mxu0 %v2513_v13  ;;  %1482 = vmatprep.subr.mxu1 %v2513_v13  ;;  %v1938_v24 = vrot.slane %v2523_v2, %v555_v42  ;;  %v662_v25 = vmul.f32 %v1935_v23, %v1897_v52  ;;  %v477_v29 = vadd.f32 %v1631_v3, %v461_v62 }
  0x56   : >> { %v521_v21 = vadd.f32 %v505_v50, %v469_v54  ;;  %1433 = vmatpush3.msra.mxu0 %v2513_v13  ;;  %1498 = vmatpush3.msra.mxu1 %v2513_v13  ;;  %v565_v30 = vmul.f32 %v1880_v45, %v1916_v59  ;;  %v714_v32 = vmul.f32 %v1945_v26, %v1900_v53  ;;  %v1989_v50 = vld [vmem:[%s1767_s24 + $0x7a] sm:$0xff]  ;;  %v1992_v54 = vld [vmem:[%s1767_s24 + $0x90] sm:$0xff]  ;;  %p1535_p7 = pnand %p1534_p6, %p1528_p3 }
  0x57   : >> { %1434 = vmatprep.subr.mxu0 %v2514_v12  ;;  %1483 = vmatprep.subr.mxu1 %v2514_v12  ;;  %v767_v33 = vmul.f32 %v1948_v27, %v1907_v56  ;;  %v819_v37 = vmul.f32 %v1951_v28, %v1924_v61  ;;  %v529_v39 = vadd.f32 %v513_v63, %v477_v29 }
  0x58   : >> { %v573_v31 = vadd.f32 %v557_v55, %v521_v21  ;;  %1435 = vmatpush3.msra.mxu0 %v2514_v12  ;;  %1499 = vmatpush3.msra.mxu1 %v2514_v12  ;;  %v618_v40 = vmul.f32 %v1963_v34, %v1892_v51  ;;  %2527 = vst [vmem:[#allocation36_spill] sm:$0xff] %v1977_v41  ;;  %2528 = vst [vmem:[#allocation37_spill] sm:$0xff] %v1989_v50 }
  0x59   : >> { %1436 = vmatprep.subr.mxu0 %v2520_v11  ;;  %1484 = vmatprep.subr.mxu1 %v2520_v11  ;;  %v871_v46 = vmul.f32 %v1972_v38, %v1938_v24  ;;  %v670_v47 = vmul.f32 %v1977_v41, %v1897_v52  ;;  %v581_v49 = vadd.f32 %v565_v30, %v529_v39  ;;  %v2005_v30 = vld [vmem:[%s1767_s24 + $0x91] sm:$0xff] }
  0x5a   : >> { %v626_v42 = vadd.f32 %v610_v22, %v573_v31  ;;  %1437 = vmatpush3.msra.mxu0 %v2520_v11  ;;  %1500 = vmatpush3.msra.mxu1 %v2520_v11  ;;  %v454_v55 = vmul.f32 %v1874_v43, %v434_v35  ;;  %v506_v62 = vmul.f32 %v1877_v44, %v486_v36  ;;  %v2008_v31 = vld [vmem:[%s1767_s24 + $0x92] sm:$0xff]  ;;  %v2013_v36 = vld [vmem:[%s1767_s24 + $0x68] sm:$0xff] }
  0x5b   : >> { %1438 = vmatprep.subr.mxu0 %v2522_v10  ;;  %1485 = vmatprep.subr.mxu1 %v2522_v10  ;;  %v722_v21 = vmul.f32 %v1989_v50, %v1900_v53  ;;  %v775_v22 = vmul.f32 %v1992_v54, %v1907_v56  ;;  %v634_v29 = vadd.f32 %v618_v40, %v581_v49  ;;  %v2022_v49 = vld [vmem:[%s1767_s24 + $0x20] sm:$0xff] }
  0x5c   : >> { %v678_v63 = vadd.f32 %v662_v25, %v626_v42  ;;  %1439 = vmatpush3.msra.mxu0 %v2522_v10  ;;  %1501 = vmatpush3.msra.mxu1 %v2522_v10  ;;  %v470_v25 = vadd.f32 %v1631_v3, %v454_v55  ;;  %v558_v35 = vmul.f32 %v1880_v45, %v538_v48 }
  0x5d   : >> { %1440 = vmatprep.subr.mxu0 %v2521_v9  ;;  %1486 = vmatprep.subr.mxu1 %v2521_v9  ;;  %v827_v40 = vmul.f32 %v2005_v30, %v1924_v61  ;;  %v879_v42 = vmul.f32 %v2008_v31, %v1938_v24  ;;  %v686_v48 = vadd.f32 %v670_v47, %v634_v29 }
  0x5e   : >> { %v730_v39 = vadd.f32 %v714_v32, %v678_v63  ;;  %1441 = vmatpush3.msra.mxu0 %v2521_v9  ;;  %1502 = vmatpush3.msra.mxu1 %v2521_v9  ;;  %v522_v55 = vadd.f32 %v506_v62, %v470_v25  ;;  %v611_v1 = vmul.f32 %v2022_v49, %v1892_v51  ;;  %v2032_v32 = vld [vmem:[%s1767_s24 + $0x21] sm:$0xff]  ;;  %v2035_v63 = vld [vmem:[%s1767_s24 + $0x6a] sm:$0xff] }
  0x5f   : >> { %1442 = vmatprep.subr.mxu0 %v2517_v8  ;;  %1487 = vmatprep.subr.mxu1 %v2517_v8  ;;  %v663_v10 = vmul.f32 %v2032_v32, %v1897_v52  ;;  %v462_v47 = vmul.f32 %v1874_v43, %v2013_v36  ;;  %v738_v62 = vadd.f32 %v722_v21, %v686_v48 }
  0x60   : >> { %v783_v2 = vadd.f32 %v767_v33, %v730_v39  ;;  %1443 = vmatpush3.msra.mxu0 %v2517_v8  ;;  %1503 = vmatpush3.msra.mxu1 %v2517_v8  ;;  %v574_v29 = vadd.f32 %v558_v35, %v522_v55  ;;  %v514_v25 = vmul.f32 %v1877_v44, %v2025_v0  ;;  %v2050_v39 = vld [vmem:[%s1767_s24 + $0x22] sm:$0xff] }
  0x61   : >> { %1444 = vmatprep.subr.mxu0 %v2519_v7  ;;  %1488 = vmatprep.subr.mxu1 %v2519_v7  ;;  %v478_v9 = vadd.f32 %v1631_v3, %v462_v47  ;;  %v566_v11 = vmul.f32 %v1880_v45, %v2035_v63  ;;  %v791_v21 = vadd.f32 %v775_v22, %v738_v62  ;;  %v2060_v55 = vld [vmem:[%s1767_s24 + $0x80] sm:$0xff] }
  0x62   : >> { %v835_v33 = vadd.f32 %v819_v37, %v783_v2  ;;  %1445 = vmatpush3.msra.mxu0 %v2519_v7  ;;  %1504 = vmatpush3.msra.mxu1 %v2519_v7  ;;  %v627_v35 = vadd.f32 %v611_v1, %v574_v29  ;;  %v715_v48 = vmul.f32 %v2050_v39, %v1900_v53  ;;  %v2065_v37 = vld [vmem:[%s1767_s24 + $0x38] sm:$0xff] }
  0x63   : >> { %2529 = vst [vmem:[#allocation38_spill] sm:$0xff] %v2060_v55  ;;  %1446 = vmatprep.subr.mxu0 %v2518_v6  ;;  %1489 = vmatprep.subr.mxu1 %v2518_v6  ;;  %v530_v47 = vadd.f32 %v514_v25, %v478_v9  ;;  %v619_v7 = vmul.f32 %v2060_v55, %v1892_v51  ;;  %v2074_v29 = vld [vmem:[%s1767_s24 + $0x39] sm:$0xff] }
  0x64   : >> { %v887_v2 = vadd.f32 %v871_v46, %v835_v33  ;;  %1447 = vmatpush3.msra.mxu0 %v2518_v6  ;;  %1505 = vmatpush3.msra.mxu1 %v2518_v6  ;;  %v843_v1 = vadd.f32 %v827_v40, %v791_v21  ;;  %v679_v22 = vadd.f32 %v663_v10, %v627_v35  ;;  %v2077_v46 = vld [vmem:[%s1767_s24 + $0x81] sm:$0xff] }
  0x65   : >> { %v768_v62 = vmul.f32 %v2065_v37, %v1907_v56  ;;  %2530 = vst [vmem:[#allocation39_spill] sm:$0xff] %v2077_v46  ;;  %1448 = vmatprep.subr.mxu0 %v2515_v5  ;;  %1490 = vmatprep.subr.mxu1 %v2515_v5  ;;  %v820_v25 = vmul.f32 %v2074_v29, %v1924_v61  ;;  %v2086_v40 = vld [vmem:[%s1767_s24 + $0x82] sm:$0xff] }
  0x66   : >> { %v903_v9 = vmax.f32 %v887_v2, 0.0  ;;  %v582_v33 = vadd.f32 %v566_v11, %v530_v47  ;;  %v671_v10 = vmul.f32 %v2077_v46, %v1897_v52  ;;  %2531 = vst [vmem:[#allocation40_spill] sm:$0xff] %v2086_v40  ;;  %1449 = vmatpush3.msra.mxu0 %v2515_v5  ;;  %1506 = vmatpush3.msra.mxu1 %v2515_v5  ;;  %v2095_v11 = vld [vmem:[%s1767_s24 + $0x3a] sm:$0xff] }
  0x67   : >> { %v895_v21 = vadd.f32 %v879_v42, %v843_v1  ;;  %v731_v35 = vadd.f32 %v715_v48, %v679_v22  ;;  %v723_v6 = vmul.f32 %v2086_v40, %v1900_v53  ;;  %1450 = vmatprep.subr.mxu0 %v2516_v4  ;;  %1491 = vmatprep.subr.mxu1 %v2516_v4  ;;  %v2106_v22 = vld [vmem:[%s1767_s24 + $0x98] sm:$0xff] }
  0x68   : >> { %v635_v2 = vadd.f32 %v619_v7, %v582_v33  ;;  %v455_v47 = vmul.f32 %v1921_v60, %v1874_v43  ;;  %v507_v8 = vmul.f32 %v1935_v23, %v1877_v44  ;;  %1451 = vmatpush3.msra.mxu0 %v2516_v4  ;;  %1507 = vmatpush3.msra.mxu1 %v2516_v4  ;;  %v2111_v33 = vld [vmem:[%s1767_s24 + $0x99] sm:$0xff] }
  0x69   : >> { %v911_v42 = vmax.f32 %v895_v21, 0.0  ;;  %v784_v48 = vadd.f32 %v768_v62, %v731_v35  ;;  %v872_v1 = vmul.f32 %v2095_v11, %v1938_v24  ;;  %1452 = vmatprep.mubr.f32.mxu0 %v903_v9  ;;  %v776_v60 = vmul.f32 %v2106_v22, %v1907_v56  ;;  %v2121_v35 = vld [vmem:[%s1767_s24 + $0x9a] sm:$0xff] }
  0x6a   : >> { %v687_v7 = vadd.f32 %v671_v10, %v635_v2  ;;  %v471_v23 = vadd.f32 %v1631_v3, %v455_v47  ;;  %v559_v4 = vmul.f32 %v1945_v26, %v1880_v45  ;;  %v828_v21 = vmul.f32 %v2111_v33, %v1924_v61 }
  0x6b   : >> { %1464 = vmatprep.mubr.f32.mxu1 %v911_v42  ;;  %v836_v62 = vadd.f32 %v820_v25, %v784_v48  ;;  %v612_v9 = vmul.f32 %v1948_v27, %v1892_v51  ;;  %v463_v5 = vmul.f32 %v1963_v34, %v1874_v43  ;;  %v515_v47 = vmul.f32 %v1977_v41, %v1877_v44 }
  0x6c   : >> { %v739_v10 = vadd.f32 %v723_v6, %v687_v7  ;;  %v523_v2 = vadd.f32 %v507_v8, %v471_v23  ;;  %v880_v25 = vmul.f32 %v2121_v35, %v1938_v24  ;;  %v664_v42 = vmul.f32 %v1951_v28, %v1897_v52  ;;  %v2132_v6 = vld [vmem:[%s1767_s24 + $0x48] sm:$0xff] }
  0x6d   : >> { %v888_v26 = vadd.f32 %v872_v1, %v836_v62  ;;  %v479_v8 = vadd.f32 %v1631_v3, %v463_v5  ;;  %v567_v7 = vmul.f32 %v1989_v50, %v1880_v45  ;;  %v716_v1 = vmul.f32 %v1972_v38, %v1900_v53 }
  0x6e   : >> { %v792_v48 = vadd.f32 %v776_v60, %v739_v10  ;;  %v575_v12 = vadd.f32 %v559_v4, %v523_v2  ;;  %v769_v62 = vmul.f32 %v2132_v6, %v1907_v56  ;;  %v620_v60 = vmul.f32 %v1992_v54, %v1892_v51  ;;  %v2144_v2 = vld [vmem:[%s1767_s24 + $0x49] sm:$0xff] }
  0x6f   : >> { %v904_v23 = vmax.f32 %v888_v26, 0.0  ;;  %v531_v5 = vadd.f32 %v515_v47, %v479_v8  ;;  %v456_v13 = vmul.f32 %v2022_v49, %v1874_v43  ;;  %v821_v26 = vmul.f32 %v2144_v2, %v1924_v61  ;;  %v2157_v47 = vld [vmem:[%s1767_s24 + $0x4a] sm:$0xff] }
  0x70   : >> { %v844_v4 = vadd.f32 %v828_v21, %v792_v48  ;;  %v628_v10 = vadd.f32 %v612_v9, %v575_v12  ;;  %v672_v14 = vmul.f32 %v2005_v30, %v1897_v52  ;;  %v508_v15 = vmul.f32 %v2032_v32, %v1877_v44  ;;  %v2160_v48 = vld [vmem:[%s1767_s24 + $0xa8] sm:$0xff] }
  0x71   : >> { %1453 = vmatmul.mubr.f32.vlgmr.msra.gmra.mxu0 %v904_v23  ;;  %v560_v12 = vmul.f32 %v2050_v39, %v1880_v45  ;;  %v583_v49 = vadd.f32 %v567_v7, %v531_v5  ;;  %v472_v8 = vadd.f32 %v1631_v3, %v456_v13  ;;  %v873_v23 = vmul.f32 %v2157_v47, %v1938_v24  ;;  %v2175_v13 = vld [vmem:[%s1767_s24 + $0xaa] sm:$0xff] }
  0x72   : >> { %v896_v21 = vadd.f32 %v880_v25, %v844_v4  ;;  %v680_v9 = vadd.f32 %v664_v42, %v628_v10  ;;  %v724_v16 = vmul.f32 %v2008_v31, %v1900_v53  ;;  %v777_v32 = vmul.f32 %v2160_v48, %v1907_v56  ;;  %v2172_v4 = vld [vmem:[%s1767_s24 + $0xa9] sm:$0xff] }
  0x73   : >> { %v613_v39 = vmul.f32 %v2065_v37, %v1892_v51  ;;  %v636_v7 = vadd.f32 %v620_v60, %v583_v49  ;;  %v524_v10 = vadd.f32 %v508_v15, %v472_v8  ;;  %v829_v5 = vmul.f32 %v2172_v4, %v1924_v61  ;;  %v2188_v49 = vld [vmem:[%s1767_s24 + $0x50] sm:$0xff] }
  0x74   : >> { %v912_v25 = vmax.f32 %v896_v21, 0.0  ;;  %v732_v42 = vadd.f32 %v716_v1, %v680_v9  ;;  %v881_v17 = vmul.f32 %v2175_v13, %v1938_v24  ;;  %v464_v18 = vmul.f32 %v2060_v55, %v1874_v43 }
  0x75   : >> { %v516_v21 = vmul.f32 %v2077_v46, %v1877_v44  ;;  %v688_v60 = vadd.f32 %v672_v14, %v636_v7  ;;  %v576_v9 = vadd.f32 %v560_v12, %v524_v10  ;;  %v665_v15 = vmul.f32 %v2074_v29, %v1897_v52  ;;  %v2203_v7 = vld [vmem:[%s1767_s24 + $0x52] sm:$0xff] }
  0x76   : >> { %1465 = vmatmul.mubr.f32.vlgmr.msra.gmra.mxu1 %v912_v25  ;;  %v785_v1 = vadd.f32 %v769_v62, %v732_v42  ;;  %v717_v8 = vmul.f32 %v2095_v11, %v1900_v53  ;;  %v770_v19 = vmul.f32 %v2188_v49, %v1907_v56  ;;  %v480_v46 = vadd.f32 %v1631_v3, %v464_v18 }
  0x77   : >> { %v568_v62 = vmul.f32 %v2086_v40, %v1880_v45  ;;  %v740_v12 = vadd.f32 %v724_v16, %v688_v60  ;;  %v629_v25 = vadd.f32 %v613_v39, %v576_v9  ;;  %v822_v42 = vmul.f32 %v2195_v20, %v1924_v61 }
  0x78   : >> { %v837_v14 = vadd.f32 %v821_v26, %v785_v1  ;;  %v532_v10 = vadd.f32 %v516_v21, %v480_v46  ;;  %v621_v55 = vmul.f32 %v2106_v22, %v1892_v51  ;;  %v457_v50 = vmul.f32 %v1948_v27, %v1874_v43 }
  0x79   : >> { %v509_v18 = vmul.f32 %v1951_v28, %v1877_v44  ;;  %v793_v26 = vadd.f32 %v777_v32, %v740_v12  ;;  %v681_v16 = vadd.f32 %v665_v15, %v629_v25  ;;  %v874_v39 = vmul.f32 %v2203_v7, %v1938_v24 }
  0x7a   : >> { %v889_v40 = vadd.f32 %v873_v23, %v837_v14  ;;  %v584_v1 = vadd.f32 %v568_v62, %v532_v10  ;;  %v673_v46 = vmul.f32 %v2111_v33, %v1897_v52  ;;  %v473_v21 = vadd.f32 %v1631_v3, %v457_v50  ;;  %v2221_v23 = vld [vmem:[%s1767_s24 + $0xb0] sm:$0xff] }
  0x7b   : >> { %v561_v60 = vmul.f32 %v1972_v38, %v1880_v45  ;;  %v845_v9 = vadd.f32 %v829_v5, %v793_v26  ;;  %v733_v41 = vadd.f32 %v717_v8, %v681_v16  ;;  %v725_v28 = vmul.f32 %v2121_v35, %v1900_v53 }
  0x7c   : >> { %v905_v27 = vmax.f32 %v889_v40, 0.0  ;;  %v637_v32 = vadd.f32 %v621_v55, %v584_v1  ;;  %v778_v15 = vmul.f32 %v2221_v23, %v1907_v56  ;;  %v525_v62 = vadd.f32 %v509_v18, %v473_v21  ;;  %v2228_v40 = vld [vmem:[%s1767_s24 + $0xb1] sm:$0xff] }
  0x7d   : >> { %v614_v50 = vmul.f32 %v2132_v6, %v1892_v51  ;;  %v897_v14 = vadd.f32 %v881_v17, %v845_v9  ;;  %v786_v38 = vadd.f32 %v770_v19, %v733_v41  ;;  %v465_v5 = vmul.f32 %v1992_v54, %v1874_v43  ;;  %v2239_v17 = vld [vmem:[%s1767_s24 + $0xb2] sm:$0xff] }
  0x7e   : >> { %1455 = vmatprep.mubr.f32.mxu0 %v905_v27  ;;  %v517_v8 = vmul.f32 %v2005_v30, %v1877_v44  ;;  %v689_v55 = vadd.f32 %v673_v46, %v637_v32  ;;  %v830_v12 = vmul.f32 %v2228_v40, %v1924_v61  ;;  %v577_v25 = vadd.f32 %v561_v60, %v525_v62 }
  0x7f   : >> { %v666_v10 = vmul.f32 %v2144_v2, %v1897_v52  ;;  %v913_v18 = vmax.f32 %v897_v14, 0.0  ;;  %v838_v26 = vadd.f32 %v822_v42, %v786_v38  ;;  %v481_v19 = vadd.f32 %v1631_v3, %v465_v5  ;;  %v2261_v5 = vld [vmem:[%s1767_s24 + $0xc0] sm:$0xff] }
  0x80   : >> { %v569_v41 = vmul.f32 %v2008_v31, %v1880_v45  ;;  %v741_v54 = vadd.f32 %v725_v28, %v689_v55  ;;  %v882_v30 = vmul.f32 %v2239_v17, %v1938_v24  ;;  %v630_v16 = vadd.f32 %v614_v50, %v577_v25 }
  0x81   : >> { %v718_v1 = vmul.f32 %v2157_v47, %v1900_v53  ;;  %1467 = vmatprep.mubr.f32.mxu1 %v913_v18  ;;  %v890_v46 = vadd.f32 %v874_v39, %v838_v26  ;;  %v771_v42 = vmul.f32 %v1907_v56, %v1910_v57  ;;  %v533_v21 = vadd.f32 %v517_v8, %v481_v19  ;;  %v2273_v18 = vld [vmem:[%s1767_s24 + $0xc1] sm:$0xff] }
  0x82   : >> { %v622_v60 = vmul.f32 %v2160_v48, %v1892_v51  ;;  %v794_v27 = vadd.f32 %v778_v15, %v741_v54  ;;  %v682_v31 = vadd.f32 %v666_v10, %v630_v16  ;;  %v458_v9 = vmul.f32 %v2065_v37, %v1874_v43 }
  0x83   : >> { %v510_v28 = vmul.f32 %v2074_v29, %v1877_v44  ;;  %v906_v32 = vmax.f32 %v890_v46, 0.0  ;;  %v823_v39 = vmul.f32 %v1924_v61, %v1913_v58  ;;  %v585_v62 = vadd.f32 %v569_v41, %v533_v21 }
  0x84   : >> { %v674_v50 = vmul.f32 %v2172_v4, %v1897_v52  ;;  %v846_v14 = vadd.f32 %v830_v12, %v794_v27  ;;  %v734_v38 = vadd.f32 %v718_v1, %v682_v31  ;;  %v474_v15 = vadd.f32 %v1631_v3, %v458_v9 }
  0x85   : >> { %v562_v37 = vmul.f32 %v2095_v11, %v1880_v45  ;;  %1456 = vmatmul.mubr.f32.gmra.mxu0 %v906_v32  ;;  %v875_v29 = vmul.f32 %v1938_v24, %v1916_v59  ;;  %v638_v8 = vadd.f32 %v622_v60, %v585_v62  ;;  %v726_v55 = vmul.f32 %v2175_v13, %v1900_v53 }
  0x86   : >> { %v779_v12 = vmul.f32 %v2261_v5, %v1907_v56  ;;  %v898_v25 = vadd.f32 %v882_v30, %v846_v14  ;;  %v787_v10 = vadd.f32 %v771_v42, %v734_v38  ;;  %v526_v26 = vadd.f32 %v510_v28, %v474_v15  ;;  %v2284_v30 = vld [vmem:[%s1767_s24 + $0xc2] sm:$0xff] }
  0x87   : >> { %v615_v11 = vmul.f32 %v2188_v49, %v1892_v51  ;;  %v690_v19 = vadd.f32 %v674_v50, %v638_v8  ;;  %v831_v41 = vmul.f32 %v2273_v18, %v1924_v61  ;;  %v466_v54 = vmul.f32 %v2106_v22, %v1874_v43 }
  0x88   : >> { %v518_v16 = vmul.f32 %v2111_v33, %v1877_v44  ;;  %v914_v1 = vmax.f32 %v898_v25, 0.0  ;;  %v839_v46 = vadd.f32 %v823_v39, %v787_v10  ;;  %v578_v42 = vadd.f32 %v562_v37, %v526_v26 }
  0x89   : >> { %v667_v21 = vmul.f32 %v2195_v20, %v1897_v52  ;;  %v742_v60 = vadd.f32 %v726_v55, %v690_v19  ;;  %v883_v27 = vmul.f32 %v2284_v30, %v1938_v24  ;;  %v482_v31 = vadd.f32 %v1631_v3, %v466_v54  ;;  %v2315_v19 = vld [vmem:[%s1767_s24 + $0xc8] sm:$0xff] }
  0x8a   : >> { %v570_v22 = vmul.f32 %v2121_v35, %v1880_v45  ;;  %1468 = vmatmul.mubr.f32.gmra.mxu1 %v914_v1  ;;  %v891_v9 = vadd.f32 %v875_v29, %v839_v46  ;;  %v631_v33 = vadd.f32 %v615_v11, %v578_v42  ;;  %v719_v28 = vmul.f32 %v2203_v7, %v1900_v53 }
  0x8b   : >> { %v772_v32 = vmul.f32 %v1907_v56, %v2013_v36  ;;  %v795_v39 = vadd.f32 %v779_v12, %v742_v60  ;;  %v534_v62 = vadd.f32 %v518_v16, %v482_v31  ;;  %v623_v50 = vmul.f32 %v2221_v23, %v1892_v51  ;;  %v2326_v60 = vld [vmem:[%s1767_s24 + $0xc9] sm:$0xff] }
  0x8c   : >> { %v459_v14 = vmul.f32 %v2132_v6, %v1874_v43  ;;  %v907_v38 = vmax.f32 %v891_v9, 0.0  ;;  %v683_v35 = vadd.f32 %v667_v21, %v631_v33  ;;  %v675_v15 = vmul.f32 %v2228_v40, %v1897_v52  ;;  %v2333_v9 = vld [vmem:[%s1767_s24 + $0xca] sm:$0xff] }
  0x8d   : >> { %v511_v37 = vmul.f32 %v2144_v2, %v1877_v44  ;;  %v847_v29 = vadd.f32 %v831_v41, %v795_v39  ;;  %v586_v8 = vadd.f32 %v570_v22, %v534_v62  ;;  %v563_v12 = vmul.f32 %v2157_v47, %v1880_v45 }
  0x8e   : >> { %v475_v55 = vadd.f32 %v1631_v3, %v459_v14  ;;  %1458 = vmatprep.mubr.f32.mxu0 %v907_v38  ;;  %v735_v25 = vadd.f32 %v719_v28, %v683_v35  ;;  %v824_v6 = vmul.f32 %v1924_v61, %v2025_v0  ;;  %v876_v10 = vmul.f32 %v1938_v24, %v2035_v63 }
  0x8f   : >> { %v727_v26 = vmul.f32 %v2239_v17, %v1900_v53  ;;  %v899_v2 = vadd.f32 %v883_v27, %v847_v29  ;;  %v639_v11 = vadd.f32 %v623_v50, %v586_v8  ;;  %v616_v47 = vmul.f32 %v1892_v51, %v1910_v57 }
  0x90   : >> { %v527_v41 = vadd.f32 %v511_v37, %v475_v55  ;;  %v788_v54 = vadd.f32 %v772_v32, %v735_v25  ;;  %v780_v16 = vmul.f32 %v2315_v19, %v1907_v56  ;;  %v467_v1 = vmul.f32 %v2160_v48, %v1874_v43 }
  0x91   : >> { %v519_v46 = vmul.f32 %v2172_v4, %v1877_v44  ;;  %v915_v42 = vmax.f32 %v899_v2, 0.0  ;;  %v691_v21 = vadd.f32 %v675_v15, %v639_v11  ;;  %v668_v31 = vmul.f32 %v1897_v52, %v1913_v58 }
  0x92   : >> { %v579_v27 = vadd.f32 %v563_v12, %v527_v41  ;;  %v840_v22 = vadd.f32 %v824_v6, %v788_v54  ;;  %v832_v57 = vmul.f32 %v2326_v60, %v1924_v61  ;;  %v483_v33 = vadd.f32 %v1631_v3, %v467_v1 }
  0x93   : >> { %v571_v48 = vmul.f32 %v2175_v13, %v1880_v45  ;;  %1470 = vmatprep.mubr.f32.mxu1 %v915_v42  ;;  %v743_v4 = vadd.f32 %v727_v26, %v691_v21  ;;  %v884_v28 = vmul.f32 %v2333_v9, %v1938_v24  ;;  %v720_v58 = vmul.f32 %v1900_v53, %v1916_v59  ;;  %v2532_v59 = vld [vmem:[#allocation36_spill] sm:$0xff] }
  0x94   : >> { %v632_v32 = vadd.f32 %v616_v47, %v579_v27  ;;  %v892_v39 = vadd.f32 %v876_v10, %v840_v22  ;;  %v773_v62 = vmul.f32 %v1963_v34, %v1907_v56  ;;  %v535_v50 = vadd.f32 %v519_v46, %v483_v33  ;;  %v1377_v21 = vld [vmem:[%s1767_s24 + $0xda] sm:$0xff] }
  0x95   : >> { %v624_v14 = vmul.f32 %v2261_v5, %v1892_v51  ;;  %v796_v38 = vadd.f32 %v780_v16, %v743_v4  ;;  %v460_v35 = vmul.f32 %v2188_v49, %v1874_v43  ;;  %v512_v15 = vmul.f32 %v2195_v20, %v1877_v44  ;;  %v1345_v5 = vld [vmem:[%s1767_s24 + $0xd8] sm:$0xff] }
  0x96   : >> { %v684_v13 = vadd.f32 %v668_v31, %v632_v32  ;;  %v908_v37 = vmax.f32 %v892_v39, 0.0  ;;  %v825_v29 = vmul.f32 %v2532_v59, %v1924_v61  ;;  %v587_v8 = vadd.f32 %v571_v48, %v535_v50  ;;  %v2533_v20 = vld [vmem:[#allocation37_spill] sm:$0xff]  ;;  %v2534_v32 = vld [vmem:[#allocation38_spill] sm:$0xff] }
  0x97   : >> { %v676_v34 = vmul.f32 %v2273_v18, %v1897_v52  ;;  %v848_v55 = vadd.f32 %v832_v57, %v796_v38  ;;  %v476_v25 = vadd.f32 %v1631_v3, %v460_v35  ;;  %v564_v49 = vmul.f32 %v2203_v7, %v1880_v45  ;;  %v1361_v18 = vld [vmem:[%s1767_s24 + $0xd9] sm:$0xff] }
  0x98   : >> { %v736_v12 = vadd.f32 %v720_v58, %v684_v13  ;;  %1459 = vmatmul.mubr.f32.gmra.mxu0 %v908_v37  ;;  %v877_v6 = vmul.f32 %v2533_v20, %v1938_v24  ;;  %v640_v10 = vadd.f32 %v624_v14, %v587_v8  ;;  %v728_v26 = vmul.f32 %v2284_v30, %v1900_v53  ;;  %v1346_v14 = vld [vmem:[%s1767_s24 + $0xe0] sm:$0xff] }
  0x99   : >> { %v900_v2 = vadd.f32 %v884_v28, %v848_v55  ;;  %v528_v41 = vadd.f32 %v512_v15, %v476_v25  ;;  %v617_v47 = vmul.f32 %v1892_v51, %v2013_v36  ;;  %v781_v16 = vmul.f32 %v1345_v5, %v1907_v56  ;;  %v2536_v35 = vld [vmem:[#allocation40_spill] sm:$0xff] }
  0x9a   : >> { %v789_v11 = vadd.f32 %v773_v62, %v736_v12  ;;  %v692_v54 = vadd.f32 %v676_v34, %v640_v10  ;;  %v468_v7 = vmul.f32 %v2221_v23, %v1874_v43  ;;  %v520_v1 = vmul.f32 %v2228_v40, %v1877_v44  ;;  %v2535_v62 = vld [vmem:[#allocation39_spill] sm:$0xff] }
  0x9b   : >> { %v916_v46 = vmax.f32 %v900_v2, 0.0  ;;  %v580_v30 = vadd.f32 %v564_v49, %v528_v41  ;;  %v669_v27 = vmul.f32 %v1897_v52, %v2025_v0  ;;  %v833_v22 = vmul.f32 %v1361_v18, %v1924_v61  ;;  %v1362_v37 = vld [vmem:[%s1767_s24 + $0xe1] sm:$0xff] }
  0x9c   : >> { %v841_v42 = vadd.f32 %v825_v29, %v789_v11  ;;  %v744_v31 = vadd.f32 %v728_v26, %v692_v54  ;;  %v484_v36 = vadd.f32 %v1631_v3, %v468_v7  ;;  %v572_v57 = vmul.f32 %v2239_v17, %v1880_v45  ;;  %v1378_v8 = vld [vmem:[%s1767_s24 + $0xe2] sm:$0xff] }
  0x9d   : >> { %1471 = vmatmul.mubr.f32.gmra.mxu1 %v916_v46  ;;  %v633_v23 = vadd.f32 %v617_v47, %v580_v30  ;;  %v721_v44 = vmul.f32 %v1900_v53, %v2035_v63  ;;  %v885_v33 = vmul.f32 %v1377_v21, %v1938_v24  ;;  %v625_v0 = vmul.f32 %v2315_v19, %v1892_v51  ;;  %v2537_v10 = vld [vmem:[#allocation35_spill] sm:$0xff] }
  0x9e   : >> { %v893_v43 = vadd.f32 %v877_v6, %v841_v42  ;;  %v797_v40 = vadd.f32 %v781_v16, %v744_v31  ;;  %v536_v48 = vadd.f32 %v520_v1, %v484_v36  ;;  %v774_v45 = vmul.f32 %v2534_v32, %v1907_v56 }
  0x9f   : >> { %v685_v28 = vadd.f32 %v669_v27, %v633_v23  ;;  %v677_v39 = vmul.f32 %v2326_v60, %v1897_v52  ;;  %v826_v50 = vmul.f32 %v2535_v62, %v1924_v61  ;;  %v729_v19 = vmul.f32 %v2333_v9, %v1900_v53 }
  0xa0   : >> { %v909_v4 = vmax.f32 %v893_v43, 0.0  ;;  %v849_v17 = vadd.f32 %v833_v22, %v797_v40  ;;  %v588_v58 = vadd.f32 %v572_v57, %v536_v48  ;;  %v878_v15 = vmul.f32 %v2536_v35, %v1938_v24 }
  0xa1   : >> { %v737_v63 = vadd.f32 %v721_v44, %v685_v28  ;;  %v782_v52 = vmul.f32 %v1346_v14, %v1907_v56  ;;  %v834_v55 = vmul.f32 %v1362_v37, %v1924_v61  ;;  %v886_v53 = vmul.f32 %v1378_v8, %v1938_v24 }
  0xa2   : >> { %1461 = vmatprep.mubr.f32.mxu0 %v909_v4  ;;  %v901_v38 = vadd.f32 %v885_v33, %v849_v17  ;;  %v641_v51 = vadd.f32 %v625_v0, %v588_v58 }
  0xa3   : >> { %v790_v13 = vadd.f32 %v774_v45, %v737_v63 }
  0xa4   : >> { %v917_v59 = vmax.f32 %v901_v38, 0.0  ;;  %v693_v29 = vadd.f32 %v677_v39, %v641_v51 }
  0xa5   : >> { %v842_v60 = vadd.f32 %v826_v50, %v790_v13 }
  0xa6   : >> { %1473 = vmatprep.mubr.f32.mxu1 %v917_v59  ;;  %v745_v34 = vadd.f32 %v729_v19, %v693_v29 }
  0xa7   : >> { %v894_v12 = vadd.f32 %v878_v15, %v842_v60 }
  0xa8   : >> { %v798_v5 = vadd.f32 %v782_v52, %v745_v34 }
  0xa9   : >> { %v910_v9 = vmax.f32 %v894_v12, 0.0 }
  0xaa   : >> { %v850_v25 = vadd.f32 %v834_v55, %v798_v5 }
  0xab   : >> { %1462 = vmatmul.mubr.f32.gmra.mxu0 %v910_v9 }
  0xac   : >> { %v902_v49 = vadd.f32 %v886_v53, %v850_v25 }
  0xae   : >> { %v918_v20 = vmax.f32 %v902_v49, 0.0 }
  0xb0   : >> { %1474 = vmatmul.mubr.f32.gmra.mxu1 %v918_v20 }
 0x131   : >> { %v1454_v6 = vpop.f32.mrf.mxu0 }
 0x132   : >> { %v997_v56 = vadd.f32 %v1454_v6, %v2537_v10 }
 0x133   : >> { %v991_v26 = vpop.f32.mrf.mxu0 }
 0x134   : >> { %v1071_v2 = vmax.f32 %v997_v56, 0.0  ;;  %v992_v11 = vadd.f32 %v2537_v10, %v991_v26 }
 0x136   : >> { %1089 = vst [vmem:[%s2401_s15 + $0x8] sm:$0xff] %v1071_v2  ;;  %v1466_v61 = vpop.f32.mrf.mxu1  ;;  %v1070_v24 = vmax.f32 %v992_v11, 0.0 }
 0x137   : >> { %v1037_v18 = vadd.f32 %v1466_v61, %v2537_v10 }
 0x138   : >> { %1088 = vst [vmem:[%s2401_s15] sm:$0xff] %v1070_v24  ;;  %v1031_v41 = vpop.f32.mrf.mxu1 }
 0x139   : >> { %v1079_v47 = vmax.f32 %v1037_v18, 0.0  ;;  %v1032_v54 = vadd.f32 %v2537_v10, %v1031_v41 }
 0x13b   : >> { %1097 = vst [vmem:[%s2401_s15 + $0x48] sm:$0xff] %v1079_v47  ;;  %v1078_v16 = vmax.f32 %v1032_v54, 0.0 }
 0x13d   : >> { %1096 = vst [vmem:[%s2401_s15 + $0x40] sm:$0xff] %v1078_v16 }
 0x145   : >> { %v1457_v7 = vpop.f32.mrf.mxu0 }
 0x146   : >> { %v1007_v1 = vadd.f32 %v1457_v7, %v2537_v10 }
 0x147   : >> { %v1001_v46 = vpop.f32.mrf.mxu0 }
 0x148   : >> { %v1073_v42 = vmax.f32 %v1007_v1, 0.0  ;;  %v1002_v21 = vadd.f32 %v2537_v10, %v1001_v46 }
 0x14a   : >> { %1091 = vst [vmem:[%s2401_s15 + $0x18] sm:$0xff] %v1073_v42  ;;  %v1469_v30 = vpop.f32.mrf.mxu1  ;;  %v1072_v27 = vmax.f32 %v1002_v21, 0.0 }
 0x14b   : >> { %v1047_v31 = vadd.f32 %v1469_v30, %v2537_v10 }
 0x14c   : >> { %1090 = vst [vmem:[%s2401_s15 + $0x10] sm:$0xff] %v1072_v27  ;;  %v1041_v22 = vpop.f32.mrf.mxu1 }
 0x14d   : >> { %v1081_v36 = vmax.f32 %v1047_v31, 0.0  ;;  %v1042_v57 = vadd.f32 %v2537_v10, %v1041_v22 }
 0x14f   : >> { %1099 = vst [vmem:[%s2401_s15 + $0x58] sm:$0xff] %v1081_v36  ;;  %v1080_v43 = vmax.f32 %v1042_v57, 0.0 }
 0x151   : >> { %1098 = vst [vmem:[%s2401_s15 + $0x50] sm:$0xff] %v1080_v43 }
 0x158   : >> { %v1460_v23 = vpop.f32.mrf.mxu0 }
 0x159   : >> { %v1017_v44 = vadd.f32 %v1460_v23, %v2537_v10 }
 0x15a   : >> { %v1011_v40 = vpop.f32.mrf.mxu0 }
 0x15b   : >> { %v1075_v33 = vmax.f32 %v1017_v44, 0.0  ;;  %v1012_v48 = vadd.f32 %v2537_v10, %v1011_v40 }
 0x15d   : >> { %1093 = vst [vmem:[%s2401_s15 + $0x28] sm:$0xff] %v1075_v33  ;;  %v1472_v0 = vpop.f32.mrf.mxu1  ;;  %v1074_v4 = vmax.f32 %v1012_v48, 0.0 }
 0x15e   : >> { %v1057_v28 = vadd.f32 %v1472_v0, %v2537_v10 }
 0x15f   : >> { %1092 = vst [vmem:[%s2401_s15 + $0x20] sm:$0xff] %v1074_v4  ;;  %v1051_v32 = vpop.f32.mrf.mxu1 }
 0x160   : >> { %v1083_v45 = vmax.f32 %v1057_v28, 0.0  ;;  %v1052_v17 = vadd.f32 %v2537_v10, %v1051_v32 }
 0x162   : >> { %1101 = vst [vmem:[%s2401_s15 + $0x68] sm:$0xff] %v1083_v45  ;;  %v1082_v58 = vmax.f32 %v1052_v17, 0.0 }
 0x164   : >> { %1100 = vst [vmem:[%s2401_s15 + $0x60] sm:$0xff] %v1082_v58 }
 0x16b   : >> { %v1463_v39 = vpop.f32.mrf.mxu0 }
 0x16c   : >> { %v1027_v63 = vadd.f32 %v1463_v39, %v2537_v10 }
 0x16d   : >> { %v1021_v62 = vpop.f32.mrf.mxu0 }
 0x16e   : >> { %v1077_v50 = vmax.f32 %v1027_v63, 0.0  ;;  %v1022_v14 = vadd.f32 %v2537_v10, %v1021_v62 }
 0x170   : >> { %1095 = vst [vmem:[%s2401_s15 + $0x38] sm:$0xff] %v1077_v50  ;;  %v1475_v38 = vpop.f32.mrf.mxu1  ;;  %v1076_v51 = vmax.f32 %v1022_v14, 0.0 }
 0x171   : >> { %v1067_v19 = vadd.f32 %v1475_v38, %v2537_v10 }
 0x172   : >> { %1094 = vst [vmem:[%s2401_s15 + $0x30] sm:$0xff] %v1076_v51  ;;  %v1061_v13 = vpop.f32.mrf.mxu1 }
 0x173   : >> { %v1085_v35 = vmax.f32 %v1067_v19, 0.0  ;;  %v1062_v15 = vadd.f32 %v2537_v10, %v1061_v13 }
 0x175   : >> { %1103 = vst [vmem:[%s2401_s15 + $0x78] sm:$0xff] %v1085_v35  ;;  %v1084_v37 = vmax.f32 %v1062_v15, 0.0 }
 0x177   : >> { %1102 = vst [vmem:[%s2401_s15 + $0x70] sm:$0xff] %v1084_v37 }
 0x178   : >> { %1538 = shalt.err (!%p1535_p7)  }
 0x179   : >> { %s1539_s9 = scalar_lea.hbm %s1108_s28, 2048  ;;  %s1541_s12 = scalar_lea.hbm %s2461_s5, 8192 }
 0x17a   : >> { %p1540_p8 = scmp.ne.s32.totalorder %s1108_s28, %s1539_s9  ;;  %p1542_p9 = scmp.lt.s32.totalorder %s1108_s28, %s2461_s5 }
 0x17b   : >> { %p1543_p10 = scmp.lt.s32.totalorder %s1541_s12, %s1539_s9 }
 0x17d   : >> { %p1544_p11 = por %p1543_p10, %p1542_p9 }
 0x17f   : >> { %p1545_p12 = pnand %p1544_p11, %p1540_p8 }
 0x181   : >> { %1548 = shalt.err (!%p1545_p12)  }
 0x182   : >> { %1120 = dma.vmem_to_hbm [thread:$0]  %s1118_s23, 2048, %s1108_s28, %s1855_s13 }
 0x183   : >> { %s2538_s21 = smov %s275_s26  ;;  %265 = sbr.rel (!%p1773_p1) target bundleno = 37 (0x25), region = 183 }
 0x188   : > { %1563 = dma.done.wait [#allocation5], 2048 }
 0x189   : > { %1564 = vsyncadd [#allocation5], 4294965248 }
 0x18a   : > { %1565 = dma.done.wait [#allocation5 + $0x1], 2048 }
 0x18b   : > { %1566 = vsyncadd [#allocation5 + $0x1], 4294965248 }
 0x18c PF: > { %s15_s18 = sadd.s32 1, %s1569_s18  }
 0x18d   : > { %p12_p13 = scmp.ge.s32.totalorder %s15_s18, 3  }
 0x18f   :  { %14 = sbr.rel (!%p12_p13) target bundleno = 1 (0x1), region = 194 }
 0x194   :  { %1127 = vsyncmov [#allocation4] }
 0x197   :  { %s1128_s13 = vpop.sfrf %1127 }
 0x198   :  { %p1384_p0 = scmp.ne.s32.totalorder %s1128_s13, 0 }
 0x19a   :  { %1132 = shalt.err (%p1384_p0)  }
 0x19b   :  { %1134 = vsyncmov [#allocation4 + $0x1] }
 0x19e   :  { %s1135_s21 = vpop.sfrf %1134 }
 0x19f   :  { %p1385_p2 = scmp.ne.s32.totalorder %s1135_s21, 0 }
 0x1a1   :  { %1139 = shalt.err (%p1385_p2)  }
 0x1a2   :  { %1140 = vsyncmov [#allocation5] }
 0x1a5   :  { %s1141_s19 = vpop.sfrf %1140 }
 0x1a6   :  { %p1386_p1 = scmp.ne.s32.totalorder %s1141_s19, 0 }
 0x1a8   :  { %1145 = shalt.err (%p1386_p1)  }
 0x1a9   :  { %1147 = vsyncmov [#allocation5 + $0x1] }
 0x1ac   :  { %s1148_s7 = vpop.sfrf %1147 }
 0x1ad   :  { %p1387_p3 = scmp.ne.s32.totalorder %s1148_s7, 0 }
 0x1af   :  { %1152 = shalt.err (%p1387_p3)  }

</bundles_post_ra>
